<compile_context>
chip_gen: v6e
topology: v6e:2x2x1
jax: 0.10.0
libtpu: 0.0.40
codegen_flags: <defaults>
</compile_context>

<pallas_src>
import functools
import math

import jax
import jax.numpy as jnp
from jax import lax
from jax.experimental import pallas as pl
from jax.experimental.pallas import tpu as pltpu

EPS = 1e-6  # LLamaConfig.eps


def _llama_block_kernel(x_ref, cos_ref, sin_ref, ln1_ref, ln2_ref,
                        wqkv_ref, wo_ref, w12_ref, w3_ref,
                        out_ref, att_ref,
                        *, n_heads, head_dim, eps, kv_tile):
    S = x_ref.shape[1]
    E = x_ref.shape[2]
    Dh = head_dim // 2
    F = 4 * E

    x = x_ref[0].astype(jnp.float32)                       # (S, E)

    # --- PMSNorm 1 (f32) ---
    xn = x * lax.rsqrt(jnp.mean(x * x, axis=-1, keepdims=True) + eps) * ln1_ref[...]

    # --- fused QKV projection (bf16 inputs, f32 accumulation on MXU) ---
    qkv = jnp.dot(xn.astype(jnp.bfloat16), wqkv_ref[...],
                  preferred_element_type=jnp.float32)       # (S, 3E) f32
    xq = qkv[:, :E]
    xk = qkv[:, E:2 * E]
    xv = qkv[:, 2 * E:]

    cos = cos_ref[...]                                      # (S, Dh) f32
    sin = sin_ref[...]
    scale = 1.0 / math.sqrt(head_dim)

    # in-kernel causal mask pieces (no (S,S) HBM input)
    row_ids = lax.broadcasted_iota(jnp.int32, (S, kv_tile), 0)
    n_kv = S // kv_tile

    # --- multi-head attention, statically unrolled over heads ---
    for h in range(n_heads):
        lo = h * head_dim
        hi = lo + head_dim
        q = xq[:, lo:hi]                                    # (S, D) f32, halves layout
        k = xk[:, lo:hi]
        v = xv[:, lo:hi].astype(jnp.bfloat16)

        # RoPE in "halves" layout (wq/wk columns pre-permuted even|odd on host):
        #   e' = e*cos - o*sin ;  o' = e*sin + o*cos
        q1, q2 = q[:, :Dh], q[:, Dh:]
        k1, k2 = k[:, :Dh], k[:, Dh:]
        qr = jnp.concatenate([q1 * cos - q2 * sin, q1 * sin + q2 * cos],
                             axis=-1).astype(jnp.bfloat16)
        kr = jnp.concatenate([k1 * cos - k2 * sin, k1 * sin + k2 * cos],
                             axis=-1).astype(jnp.bfloat16)

        # online-softmax over KV chunks (flash pattern; single chunk at test size)
        m_i = jnp.full((S, 1), -1e30, jnp.float32)
        l_i = jnp.zeros((S, 1), jnp.float32)
        acc = jnp.zeros((S, head_dim), jnp.float32)
        for c in range(n_kv):
            c0 = c * kv_tile
            k_chunk = kr[c0:c0 + kv_tile]                   # (TK, D) bf16
            v_chunk = v[c0:c0 + kv_tile]                    # (TK, D) bf16
            s = lax.dot_general(qr, k_chunk, (((1,), (1,)), ((), ())),
                                preferred_element_type=jnp.float32) * scale
            col_ids = lax.broadcasted_iota(jnp.int32, (S, kv_tile), 1) + c0
            s = s + jnp.where(col_ids <= row_ids, 0.0, -1e9)  # additive causal mask
            m_new = jnp.maximum(m_i, jnp.max(s, axis=-1, keepdims=True))
            alpha = jnp.exp(m_i - m_new)
            p = jnp.exp(s - m_new)
            l_i = alpha * l_i + jnp.sum(p, axis=-1, keepdims=True)
            acc = alpha * acc + jnp.dot(p.astype(jnp.bfloat16), v_chunk,
                                        preferred_element_type=jnp.float32)
            m_i = m_new

        # normalize with EUP reciprocal; write head slice into VMEM scratch
        att_ref[:, lo:hi] = acc * pl.reciprocal(l_i, approx=True)

    # output projection + first residual
    att = jnp.dot(att_ref[...].astype(jnp.bfloat16), wo_ref[...],
                  preferred_element_type=jnp.float32)
    h_res = x + att

    # --- PMSNorm 2 + SwiGLU FFN (w1|w2 fused) + second residual ---
    hn = h_res * lax.rsqrt(jnp.mean(h_res * h_res, axis=-1, keepdims=True) + eps) * ln2_ref[...]
    ab = jnp.dot(hn.astype(jnp.bfloat16), w12_ref[...],
                 preferred_element_type=jnp.float32)        # (S, 8E)
    a = ab[:, :F]
    b = ab[:, F:]
    g = (a * jax.nn.sigmoid(a) * b).astype(jnp.bfloat16)    # SiLU(a) * b
    ffn = jnp.dot(g, w3_ref[...], preferred_element_type=jnp.float32)

    out_ref[0] = (h_res + ffn).astype(out_ref.dtype)


def llama_block(x, params, cos_half, sin_half, *, n_heads):
    B, S, E = x.shape
    D = E // n_heads
    Dh = D // 2

    # per-head column permutation of wq/wk: interleaved (e0,o0,e1,o1,...) -> halves (e...|o...)
    base = jnp.concatenate([jnp.arange(0, D, 2), jnp.arange(1, D, 2)])
    perm = (jnp.arange(n_heads)[:, None] * D + base[None, :]).reshape(-1)

    wq_p = params["wq"][:, perm]
    wk_p = params["wk"][:, perm]
    wqkv = jnp.concatenate([wq_p, wk_p, params["wv"]], axis=1).astype(jnp.bfloat16)   # (E, 3E)
    wo = params["wo"].astype(jnp.bfloat16)                                             # (E, E)
    w12 = jnp.concatenate([params["w1"], params["w2"]], axis=1).astype(jnp.bfloat16)   # (E, 8E)
    w3 = params["w3"].astype(jnp.bfloat16)                                             # (4E, E)

    kv_tile = S if S <= 256 else 256
    assert S % kv_tile == 0

    kernel = functools.partial(_llama_block_kernel, n_heads=n_heads, head_dim=D,
                               eps=EPS, kv_tile=kv_tile)

    in_specs = [
        pl.BlockSpec((1, S, E), lambda b: (b, 0, 0)),   # x (per-batch block)
        pl.BlockSpec((S, Dh), lambda b: (0, 0)),        # cos (S, head_dim/2)
        pl.BlockSpec((S, Dh), lambda b: (0, 0)),        # sin
        pl.BlockSpec((1, E), lambda b: (0, 0)),         # ln1 weight
        pl.BlockSpec((1, E), lambda b: (0, 0)),         # ln2 weight
        pl.BlockSpec((E, 3 * E), lambda b: (0, 0)),     # fused wq|wk|wv (bf16)
        pl.BlockSpec((E, E), lambda b: (0, 0)),         # wo (bf16)
        pl.BlockSpec((E, 8 * E), lambda b: (0, 0)),     # fused w1|w2 (bf16)
        pl.BlockSpec((4 * E, E), lambda b: (0, 0)),     # w3 (bf16)
    ]
    return pl.pallas_call(
        kernel,
        out_shape=jax.ShapeDtypeStruct((B, S, E), jnp.float32),
        grid=(B,),
        in_specs=in_specs,
        out_specs=pl.BlockSpec((1, S, E), lambda b: (b, 0, 0)),
        scratch_shapes=[pltpu.VMEM((S, E), jnp.float32)],   # per-head attention output slab
        compiler_params=pltpu.CompilerParams(
            dimension_semantics=("parallel",),
            vmem_limit_bytes=32 * 1024 * 1024),
    )(x, cos_half, sin_half, params["ln1"], params["ln2"], wqkv, wo, w12, w3)


def ref_llama_block(x, params, mask, cos_sd2, sin_sd2, n_heads):
    """Pure-JAX (f32) mirror of the PyTorch LLamaBlock.forward (for verification)."""
    B, S, E = x.shape
    D = E // n_heads

    def pms(t, w):
        t = t.astype(jnp.float32)
        return t * lax.rsqrt(jnp.mean(t * t, axis=-1, keepdims=True) + EPS) * w[0]

    xn = pms(x, params["ln1"])
    xq = (xn @ params["wq"]).reshape(B, S, n_heads, D)
    xk = (xn @ params["wk"]).reshape(B, S, n_heads, D)
    xv = (xn @ params["wv"]).reshape(B, S, n_heads, D)

    cos = cos_sd2[None, :, None, :]
    sin = sin_sd2[None, :, None, :]

    def rope(t):
        te, to = t[..., 0::2], t[..., 1::2]
        oe = te * cos - to * sin
        oo = te * sin + to * cos
        return jnp.stack([oe, oo], axis=-1).reshape(B, S, n_heads, D)

    xq, xk = rope(xq), rope(xk)
    q = xq.transpose(0, 2, 1, 3)
    k = xk.transpose(0, 2, 1, 3)
    v = xv.transpose(0, 2, 1, 3)
    s = q @ k.transpose(0, 1, 3, 2) / math.sqrt(D) + mask[None, None]
    p = jax.nn.softmax(s, axis=-1)
    comb = (p @ v).transpose(0, 2, 1, 3).reshape(B, S, E)
    h = x + comb @ params["wo"]
    hn = pms(h, params["ln2"])
    a = hn @ params["w1"]
    b = hn @ params["w2"]
    return h + (jax.nn.silu(a) * b) @ params["w3"]


if __name__ == "__main__":
    B, S, n_heads, E = 2, 8, 4, 32          # batch, seq, heads, hidden
    D = E // n_heads

    key = jax.random.PRNGKey(0)
    ks = jax.random.split(key, 9)
    x = jax.random.normal(ks[0], (B, S, E), jnp.float32)

    def init(k, shape, fan_in):
        return jax.random.normal(k, shape, jnp.float32) * (1.0 / math.sqrt(fan_in))

    params = {
        "ln1": jnp.ones((1, E), jnp.float32),
        "ln2": jnp.ones((1, E), jnp.float32),
        "wq": init(ks[1], (E, E), E),
        "wk": init(ks[2], (E, E), E),
        "wv": init(ks[3], (E, E), E),
        "wo": init(ks[4], (E, E), E),
        "w1": init(ks[5], (E, 4 * E), E),
        "w2": init(ks[6], (E, 4 * E), E),
        "w3": init(ks[7], (4 * E, E), 4 * E),
    }

    # rotary frequencies: real/imag of the complex `freq` tensor, shape (S, D/2)
    inv_freq = 1.0 / (10000.0 ** (jnp.arange(0, D, 2, dtype=jnp.float32) / D))
    ang = jnp.arange(S, dtype=jnp.float32)[:, None] * inv_freq[None, :]        # (S, D/2)
    cos_sd2, sin_sd2 = jnp.cos(ang), jnp.sin(ang)

    # additive causal mask (only used by the pure-JAX reference; the kernel builds it in-VMEM)
    causal = jnp.where(jnp.arange(S)[None, :] <= jnp.arange(S)[:, None],
                       0.0, -1e9).astype(jnp.float32)

    out = llama_block(x, params, cos_sd2, sin_sd2, n_heads=n_heads)
    out = jax.block_until_ready(out)

    ref = ref_llama_block(x, params, causal, cos_sd2, sin_sd2, n_heads)
    assert out.shape == (B, S, E)
    # bf16 matmul inputs + approx reciprocal vs. the all-f32 reference -> loosened tolerance
    err = float(jnp.max(jnp.abs(out - ref)))
    assert jnp.allclose(out, ref, atol=5e-2, rtol=5e-2), err
    print("KERNEL_OK")
</pallas_src>

<mosaic_0001>
module attributes {stable_mosaic.version = 11 : i64} {
  func.func @_llama_block_kernel(%arg0: i32, %arg1: memref<1x8x32xf32, #tpu.memory_space<vmem>>, %arg2: memref<8x4xf32, #tpu.memory_space<vmem>>, %arg3: memref<8x4xf32, #tpu.memory_space<vmem>>, %arg4: memref<1x32xf32, #tpu.memory_space<vmem>>, %arg5: memref<1x32xf32, #tpu.memory_space<vmem>>, %arg6: memref<32x96xbf16, #tpu.memory_space<vmem>>, %arg7: memref<32x32xbf16, #tpu.memory_space<vmem>>, %arg8: memref<32x256xbf16, #tpu.memory_space<vmem>>, %arg9: memref<128x32xbf16, #tpu.memory_space<vmem>>, %arg10: memref<1x8x32xf32, #tpu.memory_space<vmem>>, %arg11: memref<8x32xf32, #tpu.memory_space<vmem>>) attributes {dimension_semantics = [#tpu.dimension_semantics<parallel>], iteration_bounds = array<i64: 2>, scalar_prefetch = 0 : i64, scratch_operands = 1 : i64, tpu.core_type = #tpu.core_type<tc>, window_params = [{transform_indices = @transform_0, window_bounds = array<i64: 1, 8, 32>}, {pipeline_mode = #tpu.pipeline_mode<synchronous>, transform_indices = @transform_1, window_bounds = array<i64: 8, 4>}, {pipeline_mode = #tpu.pipeline_mode<synchronous>, transform_indices = @transform_2, window_bounds = array<i64: 8, 4>}, {pipeline_mode = #tpu.pipeline_mode<synchronous>, transform_indices = @transform_3, window_bounds = array<i64: 1, 32>}, {pipeline_mode = #tpu.pipeline_mode<synchronous>, transform_indices = @transform_4, window_bounds = array<i64: 1, 32>}, {pipeline_mode = #tpu.pipeline_mode<synchronous>, transform_indices = @transform_5, window_bounds = array<i64: 32, 96>}, {pipeline_mode = #tpu.pipeline_mode<synchronous>, transform_indices = @transform_6, window_bounds = array<i64: 32, 32>}, {pipeline_mode = #tpu.pipeline_mode<synchronous>, transform_indices = @transform_7, window_bounds = array<i64: 32, 256>}, {pipeline_mode = #tpu.pipeline_mode<synchronous>, transform_indices = @transform_8, window_bounds = array<i64: 128, 32>}, {transform_indices = @transform_9, window_bounds = array<i64: 1, 8, 32>}]} {
    %c0 = arith.constant 0 : index
    %c0_0 = arith.constant 0 : index
    %c0_1 = arith.constant 0 : index
    %0 = vector.load %arg1[%c0, %c0_0, %c0_1] : memref<1x8x32xf32, #tpu.memory_space<vmem>>, vector<1x8x32xf32>
    %1 = vector.shape_cast %0 : vector<1x8x32xf32> to vector<8x32xf32>
    %2 = arith.mulf %1, %1 : vector<8x32xf32>
    %cst = arith.constant dense<0.000000e+00> : vector<8xf32>
    %3 = vector.multi_reduction <add>, %2, %cst [1] : vector<8x32xf32> to vector<8xf32>
    %4 = vector.shape_cast %3 : vector<8xf32> to vector<8x1xf32>
    %cst_2 = arith.constant 3.200000e+01 : f32
    %5 = vector.broadcast %cst_2 : f32 to vector<8x1xf32>
    %6 = arith.divf %4, %5 : vector<8x1xf32>
    %cst_3 = arith.constant 9.99999997E-7 : f32
    %7 = vector.broadcast %cst_3 : f32 to vector<8x1xf32>
    %8 = arith.addf %6, %7 : vector<8x1xf32>
    %9 = math.rsqrt %8 : vector<8x1xf32>
    %10 = vector.broadcast %9 : vector<8x1xf32> to vector<8x32xf32>
    %11 = arith.mulf %1, %10 : vector<8x32xf32>
    %c0_4 = arith.constant 0 : index
    %c0_5 = arith.constant 0 : index
    %12 = vector.load %arg4[%c0_4, %c0_5] : memref<1x32xf32, #tpu.memory_space<vmem>>, vector<1x32xf32>
    %13 = vector.broadcast %12 : vector<1x32xf32> to vector<8x32xf32>
    %14 = arith.mulf %11, %13 : vector<8x32xf32>
    %15 = arith.truncf %14 : vector<8x32xf32> to vector<8x32xbf16>
    %c0_6 = arith.constant 0 : index
    %c0_7 = arith.constant 0 : index
    %16 = vector.load %arg6[%c0_6, %c0_7] : memref<32x96xbf16, #tpu.memory_space<vmem>>, vector<32x96xbf16>
    %cst_8 = arith.constant dense<0.000000e+00> : vector<8x96xf32>
    %17 = tpu.matmul %15, %16, %cst_8 {dimension_numbers = #tpu.dot_dimension_numbers<[1], [0], [0], [1], [0, 0, 1, 1], [], []>} : vector<8x32xbf16>, vector<32x96xbf16>, vector<8x96xf32> -> vector<8x96xf32>
    %18 = vector.extract_strided_slice %17 {offsets = [0, 0], sizes = [8, 32], strides = [1, 1]} : vector<8x96xf32> to vector<8x32xf32>
    %19 = vector.extract_strided_slice %17 {offsets = [0, 32], sizes = [8, 32], strides = [1, 1]} : vector<8x96xf32> to vector<8x32xf32>
    %20 = vector.extract_strided_slice %17 {offsets = [0, 64], sizes = [8, 32], strides = [1, 1]} : vector<8x96xf32> to vector<8x32xf32>
    %c0_9 = arith.constant 0 : index
    %c0_10 = arith.constant 0 : index
    %21 = vector.load %arg2[%c0_9, %c0_10] : memref<8x4xf32, #tpu.memory_space<vmem>>, vector<8x4xf32>
    %c0_11 = arith.constant 0 : index
    %c0_12 = arith.constant 0 : index
    %22 = vector.load %arg3[%c0_11, %c0_12] : memref<8x4xf32, #tpu.memory_space<vmem>>, vector<8x4xf32>
    %23 = tpu.iota {dimensions = array<i32: 0>} : vector<8x8xi32>
    %24 = vector.extract_strided_slice %18 {offsets = [0, 0], sizes = [8, 8], strides = [1, 1]} : vector<8x32xf32> to vector<8x8xf32>
    %25 = vector.extract_strided_slice %19 {offsets = [0, 0], sizes = [8, 8], strides = [1, 1]} : vector<8x32xf32> to vector<8x8xf32>
    %26 = vector.extract_strided_slice %20 {offsets = [0, 0], sizes = [8, 8], strides = [1, 1]} : vector<8x32xf32> to vector<8x8xf32>
    %27 = arith.truncf %26 : vector<8x8xf32> to vector<8x8xbf16>
    %28 = vector.extract_strided_slice %24 {offsets = [0, 0], sizes = [8, 4], strides = [1, 1]} : vector<8x8xf32> to vector<8x4xf32>
    %29 = vector.extract_strided_slice %24 {offsets = [0, 4], sizes = [8, 4], strides = [1, 1]} : vector<8x8xf32> to vector<8x4xf32>
    %30 = vector.extract_strided_slice %25 {offsets = [0, 0], sizes = [8, 4], strides = [1, 1]} : vector<8x8xf32> to vector<8x4xf32>
    %31 = vector.extract_strided_slice %25 {offsets = [0, 4], sizes = [8, 4], strides = [1, 1]} : vector<8x8xf32> to vector<8x4xf32>
    %32 = arith.mulf %28, %21 : vector<8x4xf32>
    %33 = arith.mulf %29, %22 : vector<8x4xf32>
    %34 = arith.subf %32, %33 : vector<8x4xf32>
    %35 = arith.mulf %28, %22 : vector<8x4xf32>
    %36 = arith.mulf %29, %21 : vector<8x4xf32>
    %37 = arith.addf %35, %36 : vector<8x4xf32>
    %38 = tpu.concatenate %34, %37 in 1 : vector<8x4xf32>, vector<8x4xf32> -> vector<8x8xf32>
    %39 = arith.truncf %38 : vector<8x8xf32> to vector<8x8xbf16>
    %40 = arith.mulf %30, %21 : vector<8x4xf32>
    %41 = arith.mulf %31, %22 : vector<8x4xf32>
    %42 = arith.subf %40, %41 : vector<8x4xf32>
    %43 = arith.mulf %30, %22 : vector<8x4xf32>
    %44 = arith.mulf %31, %21 : vector<8x4xf32>
    %45 = arith.addf %43, %44 : vector<8x4xf32>
    %46 = tpu.concatenate %42, %45 in 1 : vector<8x4xf32>, vector<8x4xf32> -> vector<8x8xf32>
    %47 = arith.truncf %46 : vector<8x8xf32> to vector<8x8xbf16>
    %cst_13 = arith.constant -1.000000e+30 : f32
    %48 = vector.broadcast %cst_13 : f32 to vector<8x1xf32>
    %cst_14 = arith.constant 0.000000e+00 : f32
    %49 = vector.broadcast %cst_14 : f32 to vector<8x1xf32>
    %cst_15 = arith.constant 0.000000e+00 : f32
    %50 = vector.broadcast %cst_15 : f32 to vector<8x8xf32>
    %cst_16 = arith.constant dense<0.000000e+00> : vector<8x8xf32>
    %51 = tpu.matmul %39, %47, %cst_16 {dimension_numbers = #tpu.dot_dimension_numbers<[1], [1], [0], [0], [0, 0, 1, 0], [], []>} : vector<8x8xbf16>, vector<8x8xbf16>, vector<8x8xf32> -> vector<8x8xf32>
    %cst_17 = arith.constant 0.353553385 : f32
    %52 = vector.broadcast %cst_17 : f32 to vector<8x8xf32>
    %53 = arith.mulf %51, %52 : vector<8x8xf32>
    %54 = tpu.iota {dimensions = array<i32: 1>} : vector<8x8xi32>
    %c0_i32 = arith.constant 0 : i32
    %55 = vector.broadcast %c0_i32 : i32 to vector<8x8xi32>
    %56 = arith.addi %54, %55 : vector<8x8xi32>
    %57 = arith.cmpi sle, %56, %23 : vector<8x8xi32>
    %cst_18 = arith.constant 0.000000e+00 : f32
    %cst_19 = arith.constant -1.000000e+09 : f32
    %58 = vector.broadcast %cst_18 : f32 to vector<8x8xf32>
    %59 = vector.broadcast %cst_19 : f32 to vector<8x8xf32>
    %60 = arith.select %57, %58, %59 : vector<8x8xi1>, vector<8x8xf32>
    %61 = arith.addf %53, %60 : vector<8x8xf32>
    %cst_20 = arith.constant dense<0xFF800000> : vector<8xf32>
    %62 = vector.multi_reduction <maximumf>, %61, %cst_20 [1] : vector<8x8xf32> to vector<8xf32>
    %63 = vector.shape_cast %62 : vector<8xf32> to vector<8x1xf32>
    %64 = arith.maximumf %48, %63 : vector<8x1xf32>
    %65 = arith.subf %48, %64 : vector<8x1xf32>
    %66 = math.exp %65 : vector<8x1xf32>
    %67 = vector.broadcast %64 : vector<8x1xf32> to vector<8x8xf32>
    %68 = arith.subf %61, %67 : vector<8x8xf32>
    %69 = math.exp %68 : vector<8x8xf32>
    %70 = arith.mulf %66, %49 : vector<8x1xf32>
    %cst_21 = arith.constant dense<0.000000e+00> : vector<8xf32>
    %71 = vector.multi_reduction <add>, %69, %cst_21 [1] : vector<8x8xf32> to vector<8xf32>
    %72 = vector.shape_cast %71 : vector<8xf32> to vector<8x1xf32>
    %73 = arith.addf %70, %72 : vector<8x1xf32>
    %74 = vector.broadcast %66 : vector<8x1xf32> to vector<8x8xf32>
    %75 = arith.mulf %74, %50 : vector<8x8xf32>
    %76 = arith.truncf %69 : vector<8x8xf32> to vector<8x8xbf16>
    %cst_22 = arith.constant dense<0.000000e+00> : vector<8x8xf32>
    %77 = tpu.matmul %76, %27, %cst_22 {dimension_numbers = #tpu.dot_dimension_numbers<[1], [0], [0], [1], [0, 0, 1, 1], [], []>} : vector<8x8xbf16>, vector<8x8xbf16>, vector<8x8xf32> -> vector<8x8xf32>
    %78 = arith.addf %75, %77 : vector<8x8xf32>
    %79 = tpu.reciprocal %73 {approx = true} : vector<8x1xf32> -> vector<8x1xf32>
    %80 = vector.broadcast %79 : vector<8x1xf32> to vector<8x8xf32>
    %81 = arith.mulf %78, %80 : vector<8x8xf32>
    %c0_23 = arith.constant 0 : index
    %c0_24 = arith.constant 0 : index
    %82 = vector.load %arg11[%c0_23, %c0_24] : memref<8x32xf32, #tpu.memory_space<vmem>>, vector<8x8xf32>
    tpu.vector_store %arg11[%c0_23, %c0_24], %81 {strides = array<i32>} : memref<8x32xf32, #tpu.memory_space<vmem>>, vector<8x8xf32>,
    %83 = vector.extract_strided_slice %18 {offsets = [0, 8], sizes = [8, 8], strides = [1, 1]} : vector<8x32xf32> to vector<8x8xf32>
    %84 = vector.extract_strided_slice %19 {offsets = [0, 8], sizes = [8, 8], strides = [1, 1]} : vector<8x32xf32> to vector<8x8xf32>
    %85 = vector.extract_strided_slice %20 {offsets = [0, 8], sizes = [8, 8], strides = [1, 1]} : vector<8x32xf32> to vector<8x8xf32>
    %86 = arith.truncf %85 : vector<8x8xf32> to vector<8x8xbf16>
    %87 = vector.extract_strided_slice %83 {offsets = [0, 0], sizes = [8, 4], strides = [1, 1]} : vector<8x8xf32> to vector<8x4xf32>
    %88 = vector.extract_strided_slice %83 {offsets = [0, 4], sizes = [8, 4], strides = [1, 1]} : vector<8x8xf32> to vector<8x4xf32>
    %89 = vector.extract_strided_slice %84 {offsets = [0, 0], sizes = [8, 4], strides = [1, 1]} : vector<8x8xf32> to vector<8x4xf32>
    %90 = vector.extract_strided_slice %84 {offsets = [0, 4], sizes = [8, 4], strides = [1, 1]} : vector<8x8xf32> to vector<8x4xf32>
    %91 = arith.mulf %87, %21 : vector<8x4xf32>
    %92 = arith.mulf %88, %22 : vector<8x4xf32>
    %93 = arith.subf %91, %92 : vector<8x4xf32>
    %94 = arith.mulf %87, %22 : vector<8x4xf32>
    %95 = arith.mulf %88, %21 : vector<8x4xf32>
    %96 = arith.addf %94, %95 : vector<8x4xf32>
    %97 = tpu.concatenate %93, %96 in 1 : vector<8x4xf32>, vector<8x4xf32> -> vector<8x8xf32>
    %98 = arith.truncf %97 : vector<8x8xf32> to vector<8x8xbf16>
    %99 = arith.mulf %89, %21 : vector<8x4xf32>
    %100 = arith.mulf %90, %22 : vector<8x4xf32>
    %101 = arith.subf %99, %100 : vector<8x4xf32>
    %102 = arith.mulf %89, %22 : vector<8x4xf32>
    %103 = arith.mulf %90, %21 : vector<8x4xf32>
    %104 = arith.addf %102, %103 : vector<8x4xf32>
    %105 = tpu.concatenate %101, %104 in 1 : vector<8x4xf32>, vector<8x4xf32> -> vector<8x8xf32>
    %106 = arith.truncf %105 : vector<8x8xf32> to vector<8x8xbf16>
    %cst_25 = arith.constant -1.000000e+30 : f32
    %107 = vector.broadcast %cst_25 : f32 to vector<8x1xf32>
    %cst_26 = arith.constant 0.000000e+00 : f32
    %108 = vector.broadcast %cst_26 : f32 to vector<8x1xf32>
    %cst_27 = arith.constant 0.000000e+00 : f32
    %109 = vector.broadcast %cst_27 : f32 to vector<8x8xf32>
    %cst_28 = arith.constant dense<0.000000e+00> : vector<8x8xf32>
    %110 = tpu.matmul %98, %106, %cst_28 {dimension_numbers = #tpu.dot_dimension_numbers<[1], [1], [0], [0], [0, 0, 1, 0], [], []>} : vector<8x8xbf16>, vector<8x8xbf16>, vector<8x8xf32> -> vector<8x8xf32>
    %cst_29 = arith.constant 0.353553385 : f32
    %111 = vector.broadcast %cst_29 : f32 to vector<8x8xf32>
    %112 = arith.mulf %110, %111 : vector<8x8xf32>
    %113 = tpu.iota {dimensions = array<i32: 1>} : vector<8x8xi32>
    %c0_i32_30 = arith.constant 0 : i32
    %114 = vector.broadcast %c0_i32_30 : i32 to vector<8x8xi32>
    %115 = arith.addi %113, %114 : vector<8x8xi32>
    %116 = arith.cmpi sle, %115, %23 : vector<8x8xi32>
    %cst_31 = arith.constant 0.000000e+00 : f32
    %cst_32 = arith.constant -1.000000e+09 : f32
    %117 = vector.broadcast %cst_31 : f32 to vector<8x8xf32>
    %118 = vector.broadcast %cst_32 : f32 to vector<8x8xf32>
    %119 = arith.select %116, %117, %118 : vector<8x8xi1>, vector<8x8xf32>
    %120 = arith.addf %112, %119 : vector<8x8xf32>
    %cst_33 = arith.constant dense<0xFF800000> : vector<8xf32>
    %121 = vector.multi_reduction <maximumf>, %120, %cst_33 [1] : vector<8x8xf32> to vector<8xf32>
    %122 = vector.shape_cast %121 : vector<8xf32> to vector<8x1xf32>
    %123 = arith.maximumf %107, %122 : vector<8x1xf32>
    %124 = arith.subf %107, %123 : vector<8x1xf32>
    %125 = math.exp %124 : vector<8x1xf32>
    %126 = vector.broadcast %123 : vector<8x1xf32> to vector<8x8xf32>
    %127 = arith.subf %120, %126 : vector<8x8xf32>
    %128 = math.exp %127 : vector<8x8xf32>
    %129 = arith.mulf %125, %108 : vector<8x1xf32>
    %cst_34 = arith.constant dense<0.000000e+00> : vector<8xf32>
    %130 = vector.multi_reduction <add>, %128, %cst_34 [1] : vector<8x8xf32> to vector<8xf32>
    %131 = vector.shape_cast %130 : vector<8xf32> to vector<8x1xf32>
    %132 = arith.addf %129, %131 : vector<8x1xf32>
    %133 = vector.broadcast %125 : vector<8x1xf32> to vector<8x8xf32>
    %134 = arith.mulf %133, %109 : vector<8x8xf32>
    %135 = arith.truncf %128 : vector<8x8xf32> to vector<8x8xbf16>
    %cst_35 = arith.constant dense<0.000000e+00> : vector<8x8xf32>
    %136 = tpu.matmul %135, %86, %cst_35 {dimension_numbers = #tpu.dot_dimension_numbers<[1], [0], [0], [1], [0, 0, 1, 1], [], []>} : vector<8x8xbf16>, vector<8x8xbf16>, vector<8x8xf32> -> vector<8x8xf32>
    %137 = arith.addf %134, %136 : vector<8x8xf32>
    %138 = tpu.reciprocal %132 {approx = true} : vector<8x1xf32> -> vector<8x1xf32>
    %139 = vector.broadcast %138 : vector<8x1xf32> to vector<8x8xf32>
    %140 = arith.mulf %137, %139 : vector<8x8xf32>
    %c0_36 = arith.constant 0 : index
    %c8 = arith.constant 8 : index
    %141 = vector.load %arg11[%c0_36, %c8] : memref<8x32xf32, #tpu.memory_space<vmem>>, vector<8x8xf32>
    tpu.vector_store %arg11[%c0_36, %c8], %140 {strides = array<i32>} : memref<8x32xf32, #tpu.memory_space<vmem>>, vector<8x8xf32>,
    %142 = vector.extract_strided_slice %18 {offsets = [0, 16], sizes = [8, 8], strides = [1, 1]} : vector<8x32xf32> to vector<8x8xf32>
    %143 = vector.extract_strided_slice %19 {offsets = [0, 16], sizes = [8, 8], strides = [1, 1]} : vector<8x32xf32> to vector<8x8xf32>
    %144 = vector.extract_strided_slice %20 {offsets = [0, 16], sizes = [8, 8], strides = [1, 1]} : vector<8x32xf32> to vector<8x8xf32>
    %145 = arith.truncf %144 : vector<8x8xf32> to vector<8x8xbf16>
    %146 = vector.extract_strided_slice %142 {offsets = [0, 0], sizes = [8, 4], strides = [1, 1]} : vector<8x8xf32> to vector<8x4xf32>
    %147 = vector.extract_strided_slice %142 {offsets = [0, 4], sizes = [8, 4], strides = [1, 1]} : vector<8x8xf32> to vector<8x4xf32>
    %148 = vector.extract_strided_slice %143 {offsets = [0, 0], sizes = [8, 4], strides = [1, 1]} : vector<8x8xf32> to vector<8x4xf32>
    %149 = vector.extract_strided_slice %143 {offsets = [0, 4], sizes = [8, 4], strides = [1, 1]} : vector<8x8xf32> to vector<8x4xf32>
    %150 = arith.mulf %146, %21 : vector<8x4xf32>
    %151 = arith.mulf %147, %22 : vector<8x4xf32>
    %152 = arith.subf %150, %151 : vector<8x4xf32>
    %153 = arith.mulf %146, %22 : vector<8x4xf32>
    %154 = arith.mulf %147, %21 : vector<8x4xf32>
    %155 = arith.addf %153, %154 : vector<8x4xf32>
    %156 = tpu.concatenate %152, %155 in 1 : vector<8x4xf32>, vector<8x4xf32> -> vector<8x8xf32>
    %157 = arith.truncf %156 : vector<8x8xf32> to vector<8x8xbf16>
    %158 = arith.mulf %148, %21 : vector<8x4xf32>
    %159 = arith.mulf %149, %22 : vector<8x4xf32>
    %160 = arith.subf %158, %159 : vector<8x4xf32>
    %161 = arith.mulf %148, %22 : vector<8x4xf32>
    %162 = arith.mulf %149, %21 : vector<8x4xf32>
    %163 = arith.addf %161, %162 : vector<8x4xf32>
    %164 = tpu.concatenate %160, %163 in 1 : vector<8x4xf32>, vector<8x4xf32> -> vector<8x8xf32>
    %165 = arith.truncf %164 : vector<8x8xf32> to vector<8x8xbf16>
    %cst_37 = arith.constant -1.000000e+30 : f32
    %166 = vector.broadcast %cst_37 : f32 to vector<8x1xf32>
    %cst_38 = arith.constant 0.000000e+00 : f32
    %167 = vector.broadcast %cst_38 : f32 to vector<8x1xf32>
    %cst_39 = arith.constant 0.000000e+00 : f32
    %168 = vector.broadcast %cst_39 : f32 to vector<8x8xf32>
    %cst_40 = arith.constant dense<0.000000e+00> : vector<8x8xf32>
    %169 = tpu.matmul %157, %165, %cst_40 {dimension_numbers = #tpu.dot_dimension_numbers<[1], [1], [0], [0], [0, 0, 1, 0], [], []>} : vector<8x8xbf16>, vector<8x8xbf16>, vector<8x8xf32> -> vector<8x8xf32>
    %cst_41 = arith.constant 0.353553385 : f32
    %170 = vector.broadcast %cst_41 : f32 to vector<8x8xf32>
    %171 = arith.mulf %169, %170 : vector<8x8xf32>
    %172 = tpu.iota {dimensions = array<i32: 1>} : vector<8x8xi32>
    %c0_i32_42 = arith.constant 0 : i32
    %173 = vector.broadcast %c0_i32_42 : i32 to vector<8x8xi32>
    %174 = arith.addi %172, %173 : vector<8x8xi32>
    %175 = arith.cmpi sle, %174, %23 : vector<8x8xi32>
    %cst_43 = arith.constant 0.000000e+00 : f32
    %cst_44 = arith.constant -1.000000e+09 : f32
    %176 = vector.broadcast %cst_43 : f32 to vector<8x8xf32>
    %177 = vector.broadcast %cst_44 : f32 to vector<8x8xf32>
    %178 = arith.select %175, %176, %177 : vector<8x8xi1>, vector<8x8xf32>
    %179 = arith.addf %171, %178 : vector<8x8xf32>
    %cst_45 = arith.constant dense<0xFF800000> : vector<8xf32>
    %180 = vector.multi_reduction <maximumf>, %179, %cst_45 [1] : vector<8x8xf32> to vector<8xf32>
    %181 = vector.shape_cast %180 : vector<8xf32> to vector<8x1xf32>
    %182 = arith.maximumf %166, %181 : vector<8x1xf32>
    %183 = arith.subf %166, %182 : vector<8x1xf32>
    %184 = math.exp %183 : vector<8x1xf32>
    %185 = vector.broadcast %182 : vector<8x1xf32> to vector<8x8xf32>
    %186 = arith.subf %179, %185 : vector<8x8xf32>
    %187 = math.exp %186 : vector<8x8xf32>
    %188 = arith.mulf %184, %167 : vector<8x1xf32>
    %cst_46 = arith.constant dense<0.000000e+00> : vector<8xf32>
    %189 = vector.multi_reduction <add>, %187, %cst_46 [1] : vector<8x8xf32> to vector<8xf32>
    %190 = vector.shape_cast %189 : vector<8xf32> to vector<8x1xf32>
    %191 = arith.addf %188, %190 : vector<8x1xf32>
    %192 = vector.broadcast %184 : vector<8x1xf32> to vector<8x8xf32>
    %193 = arith.mulf %192, %168 : vector<8x8xf32>
    %194 = arith.truncf %187 : vector<8x8xf32> to vector<8x8xbf16>
    %cst_47 = arith.constant dense<0.000000e+00> : vector<8x8xf32>
    %195 = tpu.matmul %194, %145, %cst_47 {dimension_numbers = #tpu.dot_dimension_numbers<[1], [0], [0], [1], [0, 0, 1, 1], [], []>} : vector<8x8xbf16>, vector<8x8xbf16>, vector<8x8xf32> -> vector<8x8xf32>
    %196 = arith.addf %193, %195 : vector<8x8xf32>
    %197 = tpu.reciprocal %191 {approx = true} : vector<8x1xf32> -> vector<8x1xf32>
    %198 = vector.broadcast %197 : vector<8x1xf32> to vector<8x8xf32>
    %199 = arith.mulf %196, %198 : vector<8x8xf32>
    %c0_48 = arith.constant 0 : index
    %c16 = arith.constant 16 : index
    %200 = vector.load %arg11[%c0_48, %c16] : memref<8x32xf32, #tpu.memory_space<vmem>>, vector<8x8xf32>
    tpu.vector_store %arg11[%c0_48, %c16], %199 {strides = array<i32>} : memref<8x32xf32, #tpu.memory_space<vmem>>, vector<8x8xf32>,
    %201 = vector.extract_strided_slice %18 {offsets = [0, 24], sizes = [8, 8], strides = [1, 1]} : vector<8x32xf32> to vector<8x8xf32>
    %202 = vector.extract_strided_slice %19 {offsets = [0, 24], sizes = [8, 8], strides = [1, 1]} : vector<8x32xf32> to vector<8x8xf32>
    %203 = vector.extract_strided_slice %20 {offsets = [0, 24], sizes = [8, 8], strides = [1, 1]} : vector<8x32xf32> to vector<8x8xf32>
    %204 = arith.truncf %203 : vector<8x8xf32> to vector<8x8xbf16>
    %205 = vector.extract_strided_slice %201 {offsets = [0, 0], sizes = [8, 4], strides = [1, 1]} : vector<8x8xf32> to vector<8x4xf32>
    %206 = vector.extract_strided_slice %201 {offsets = [0, 4], sizes = [8, 4], strides = [1, 1]} : vector<8x8xf32> to vector<8x4xf32>
    %207 = vector.extract_strided_slice %202 {offsets = [0, 0], sizes = [8, 4], strides = [1, 1]} : vector<8x8xf32> to vector<8x4xf32>
    %208 = vector.extract_strided_slice %202 {offsets = [0, 4], sizes = [8, 4], strides = [1, 1]} : vector<8x8xf32> to vector<8x4xf32>
    %209 = arith.mulf %205, %21 : vector<8x4xf32>
    %210 = arith.mulf %206, %22 : vector<8x4xf32>
    %211 = arith.subf %209, %210 : vector<8x4xf32>
    %212 = arith.mulf %205, %22 : vector<8x4xf32>
    %213 = arith.mulf %206, %21 : vector<8x4xf32>
    %214 = arith.addf %212, %213 : vector<8x4xf32>
    %215 = tpu.concatenate %211, %214 in 1 : vector<8x4xf32>, vector<8x4xf32> -> vector<8x8xf32>
    %216 = arith.truncf %215 : vector<8x8xf32> to vector<8x8xbf16>
    %217 = arith.mulf %207, %21 : vector<8x4xf32>
    %218 = arith.mulf %208, %22 : vector<8x4xf32>
    %219 = arith.subf %217, %218 : vector<8x4xf32>
    %220 = arith.mulf %207, %22 : vector<8x4xf32>
    %221 = arith.mulf %208, %21 : vector<8x4xf32>
    %222 = arith.addf %220, %221 : vector<8x4xf32>
    %223 = tpu.concatenate %219, %222 in 1 : vector<8x4xf32>, vector<8x4xf32> -> vector<8x8xf32>
    %224 = arith.truncf %223 : vector<8x8xf32> to vector<8x8xbf16>
    %cst_49 = arith.constant -1.000000e+30 : f32
    %225 = vector.broadcast %cst_49 : f32 to vector<8x1xf32>
    %cst_50 = arith.constant 0.000000e+00 : f32
    %226 = vector.broadcast %cst_50 : f32 to vector<8x1xf32>
    %cst_51 = arith.constant 0.000000e+00 : f32
    %227 = vector.broadcast %cst_51 : f32 to vector<8x8xf32>
    %cst_52 = arith.constant dense<0.000000e+00> : vector<8x8xf32>
    %228 = tpu.matmul %216, %224, %cst_52 {dimension_numbers = #tpu.dot_dimension_numbers<[1], [1], [0], [0], [0, 0, 1, 0], [], []>} : vector<8x8xbf16>, vector<8x8xbf16>, vector<8x8xf32> -> vector<8x8xf32>
    %cst_53 = arith.constant 0.353553385 : f32
    %229 = vector.broadcast %cst_53 : f32 to vector<8x8xf32>
    %230 = arith.mulf %228, %229 : vector<8x8xf32>
    %231 = tpu.iota {dimensions = array<i32: 1>} : vector<8x8xi32>
    %c0_i32_54 = arith.constant 0 : i32
    %232 = vector.broadcast %c0_i32_54 : i32 to vector<8x8xi32>
    %233 = arith.addi %231, %232 : vector<8x8xi32>
    %234 = arith.cmpi sle, %233, %23 : vector<8x8xi32>
    %cst_55 = arith.constant 0.000000e+00 : f32
    %cst_56 = arith.constant -1.000000e+09 : f32
    %235 = vector.broadcast %cst_55 : f32 to vector<8x8xf32>
    %236 = vector.broadcast %cst_56 : f32 to vector<8x8xf32>
    %237 = arith.select %234, %235, %236 : vector<8x8xi1>, vector<8x8xf32>
    %238 = arith.addf %230, %237 : vector<8x8xf32>
    %cst_57 = arith.constant dense<0xFF800000> : vector<8xf32>
    %239 = vector.multi_reduction <maximumf>, %238, %cst_57 [1] : vector<8x8xf32> to vector<8xf32>
    %240 = vector.shape_cast %239 : vector<8xf32> to vector<8x1xf32>
    %241 = arith.maximumf %225, %240 : vector<8x1xf32>
    %242 = arith.subf %225, %241 : vector<8x1xf32>
    %243 = math.exp %242 : vector<8x1xf32>
    %244 = vector.broadcast %241 : vector<8x1xf32> to vector<8x8xf32>
    %245 = arith.subf %238, %244 : vector<8x8xf32>
    %246 = math.exp %245 : vector<8x8xf32>
    %247 = arith.mulf %243, %226 : vector<8x1xf32>
    %cst_58 = arith.constant dense<0.000000e+00> : vector<8xf32>
    %248 = vector.multi_reduction <add>, %246, %cst_58 [1] : vector<8x8xf32> to vector<8xf32>
    %249 = vector.shape_cast %248 : vector<8xf32> to vector<8x1xf32>
    %250 = arith.addf %247, %249 : vector<8x1xf32>
    %251 = vector.broadcast %243 : vector<8x1xf32> to vector<8x8xf32>
    %252 = arith.mulf %251, %227 : vector<8x8xf32>
    %253 = arith.truncf %246 : vector<8x8xf32> to vector<8x8xbf16>
    %cst_59 = arith.constant dense<0.000000e+00> : vector<8x8xf32>
    %254 = tpu.matmul %253, %204, %cst_59 {dimension_numbers = #tpu.dot_dimension_numbers<[1], [0], [0], [1], [0, 0, 1, 1], [], []>} : vector<8x8xbf16>, vector<8x8xbf16>, vector<8x8xf32> -> vector<8x8xf32>
    %255 = arith.addf %252, %254 : vector<8x8xf32>
    %256 = tpu.reciprocal %250 {approx = true} : vector<8x1xf32> -> vector<8x1xf32>
    %257 = vector.broadcast %256 : vector<8x1xf32> to vector<8x8xf32>
    %258 = arith.mulf %255, %257 : vector<8x8xf32>
    %c0_60 = arith.constant 0 : index
    %c24 = arith.constant 24 : index
    %259 = vector.load %arg11[%c0_60, %c24] : memref<8x32xf32, #tpu.memory_space<vmem>>, vector<8x8xf32>
    tpu.vector_store %arg11[%c0_60, %c24], %258 {strides = array<i32>} : memref<8x32xf32, #tpu.memory_space<vmem>>, vector<8x8xf32>,
    %c0_61 = arith.constant 0 : index
    %c0_62 = arith.constant 0 : index
    %260 = vector.load %arg11[%c0_61, %c0_62] : memref<8x32xf32, #tpu.memory_space<vmem>>, vector<8x32xf32>
    %261 = arith.truncf %260 : vector<8x32xf32> to vector<8x32xbf16>
    %c0_63 = arith.constant 0 : index
    %c0_64 = arith.constant 0 : index
    %262 = vector.load %arg7[%c0_63, %c0_64] : memref<32x32xbf16, #tpu.memory_space<vmem>>, vector<32x32xbf16>
    %cst_65 = arith.constant dense<0.000000e+00> : vector<8x32xf32>
    %263 = tpu.matmul %261, %262, %cst_65 {dimension_numbers = #tpu.dot_dimension_numbers<[1], [0], [0], [1], [0, 0, 1, 1], [], []>} : vector<8x32xbf16>, vector<32x32xbf16>, vector<8x32xf32> -> vector<8x32xf32>
    %264 = arith.addf %1, %263 : vector<8x32xf32>
    %265 = arith.mulf %264, %264 : vector<8x32xf32>
    %cst_66 = arith.constant dense<0.000000e+00> : vector<8xf32>
    %266 = vector.multi_reduction <add>, %265, %cst_66 [1] : vector<8x32xf32> to vector<8xf32>
    %267 = vector.shape_cast %266 : vector<8xf32> to vector<8x1xf32>
    %cst_67 = arith.constant 3.200000e+01 : f32
    %268 = vector.broadcast %cst_67 : f32 to vector<8x1xf32>
    %269 = arith.divf %267, %268 : vector<8x1xf32>
    %cst_68 = arith.constant 9.99999997E-7 : f32
    %270 = vector.broadcast %cst_68 : f32 to vector<8x1xf32>
    %271 = arith.addf %269, %270 : vector<8x1xf32>
    %272 = math.rsqrt %271 : vector<8x1xf32>
    %273 = vector.broadcast %272 : vector<8x1xf32> to vector<8x32xf32>
    %274 = arith.mulf %264, %273 : vector<8x32xf32>
    %c0_69 = arith.constant 0 : index
    %c0_70 = arith.constant 0 : index
    %275 = vector.load %arg5[%c0_69, %c0_70] : memref<1x32xf32, #tpu.memory_space<vmem>>, vector<1x32xf32>
    %276 = vector.broadcast %275 : vector<1x32xf32> to vector<8x32xf32>
    %277 = arith.mulf %274, %276 : vector<8x32xf32>
    %278 = arith.truncf %277 : vector<8x32xf32> to vector<8x32xbf16>
    %c0_71 = arith.constant 0 : index
    %c0_72 = arith.constant 0 : index
    %279 = vector.load %arg8[%c0_71, %c0_72] : memref<32x256xbf16, #tpu.memory_space<vmem>>, vector<32x256xbf16>
    %cst_73 = arith.constant dense<0.000000e+00> : vector<8x256xf32>
    %280 = tpu.matmul %278, %279, %cst_73 {dimension_numbers = #tpu.dot_dimension_numbers<[1], [0], [0], [1], [0, 0, 1, 1], [], []>} : vector<8x32xbf16>, vector<32x256xbf16>, vector<8x256xf32> -> vector<8x256xf32>
    %281 = vector.extract_strided_slice %280 {offsets = [0, 0], sizes = [8, 128], strides = [1, 1]} : vector<8x256xf32> to vector<8x128xf32>
    %282 = vector.extract_strided_slice %280 {offsets = [0, 128], sizes = [8, 128], strides = [1, 1]} : vector<8x256xf32> to vector<8x128xf32>
    %283 = arith.negf %281 : vector<8x128xf32>
    %284 = math.exp %283 : vector<8x128xf32>
    %cst_74 = arith.constant 1.000000e+00 : f32
    %285 = vector.broadcast %cst_74 : f32 to vector<8x128xf32>
    %286 = arith.addf %285, %284 : vector<8x128xf32>
    %287 = arith.divf %285, %286 : vector<8x128xf32>
    %288 = arith.mulf %281, %287 : vector<8x128xf32>
    %289 = arith.mulf %288, %282 : vector<8x128xf32>
    %290 = arith.truncf %289 : vector<8x128xf32> to vector<8x128xbf16>
    %c0_75 = arith.constant 0 : index
    %c0_76 = arith.constant 0 : index
    %291 = vector.load %arg9[%c0_75, %c0_76] : memref<128x32xbf16, #tpu.memory_space<vmem>>, vector<128x32xbf16>
    %cst_77 = arith.constant dense<0.000000e+00> : vector<8x32xf32>
    %292 = tpu.matmul %290, %291, %cst_77 {dimension_numbers = #tpu.dot_dimension_numbers<[1], [0], [0], [1], [0, 0, 1, 1], [], []>} : vector<8x128xbf16>, vector<128x32xbf16>, vector<8x32xf32> -> vector<8x32xf32>
    %293 = arith.addf %264, %292 : vector<8x32xf32>
    %c0_78 = arith.constant 0 : index
    %c0_79 = arith.constant 0 : index
    %c0_80 = arith.constant 0 : index
    %294 = vector.load %arg10[%c0_78, %c0_79, %c0_80] : memref<1x8x32xf32, #tpu.memory_space<vmem>>, vector<1x8x32xf32>
    %295 = vector.shape_cast %294 : vector<1x8x32xf32> to vector<8x32xf32>
    %296 = vector.shape_cast %293 : vector<8x32xf32> to vector<1x8x32xf32>
    tpu.vector_store %arg10[%c0_78, %c0_79, %c0_80], %296 {strides = array<i32>} : memref<1x8x32xf32, #tpu.memory_space<vmem>>, vector<1x8x32xf32>,
    return
  }
  func.func @transform_0(%arg0: i32) -> (i32, i32, i32) {
    %c0_i32 = arith.constant 0 : i32
    %c0_i32_0 = arith.constant 0 : i32
    %c0_i32_1 = arith.constant 0 : i32
    return %arg0, %c0_i32, %c0_i32_0 : i32, i32, i32
  }
  func.func @transform_1(%arg0: i32) -> (i32, i32) {
    %c0_i32 = arith.constant 0 : i32
    %c0_i32_0 = arith.constant 0 : i32
    %c0_i32_1 = arith.constant 0 : i32
    return %c0_i32, %c0_i32_0 : i32, i32
  }
  func.func @transform_2(%arg0: i32) -> (i32, i32) {
    %c0_i32 = arith.constant 0 : i32
    %c0_i32_0 = arith.constant 0 : i32
    %c0_i32_1 = arith.constant 0 : i32
    return %c0_i32, %c0_i32_0 : i32, i32
  }
  func.func @transform_3(%arg0: i32) -> (i32, i32) {
    %c0_i32 = arith.constant 0 : i32
    %c0_i32_0 = arith.constant 0 : i32
    %c0_i32_1 = arith.constant 0 : i32
    return %c0_i32, %c0_i32_0 : i32, i32
  }
  func.func @transform_4(%arg0: i32) -> (i32, i32) {
    %c0_i32 = arith.constant 0 : i32
    %c0_i32_0 = arith.constant 0 : i32
    %c0_i32_1 = arith.constant 0 : i32
    return %c0_i32, %c0_i32_0 : i32, i32
  }
  func.func @transform_5(%arg0: i32) -> (i32, i32) {
    %c0_i32 = arith.constant 0 : i32
    %c0_i32_0 = arith.constant 0 : i32
    %c0_i32_1 = arith.constant 0 : i32
    return %c0_i32, %c0_i32_0 : i32, i32
  }
  func.func @transform_6(%arg0: i32) -> (i32, i32) {
    %c0_i32 = arith.constant 0 : i32
    %c0_i32_0 = arith.constant 0 : i32
    %c0_i32_1 = arith.constant 0 : i32
    return %c0_i32, %c0_i32_0 : i32, i32
  }
  func.func @transform_7(%arg0: i32) -> (i32, i32) {
    %c0_i32 = arith.constant 0 : i32
    %c0_i32_0 = arith.constant 0 : i32
    %c0_i32_1 = arith.constant 0 : i32
    return %c0_i32, %c0_i32_0 : i32, i32
  }
  func.func @transform_8(%arg0: i32) -> (i32, i32) {
    %c0_i32 = arith.constant 0 : i32
    %c0_i32_0 = arith.constant 0 : i32
    %c0_i32_1 = arith.constant 0 : i32
    return %c0_i32, %c0_i32_0 : i32, i32
  }
  func.func @transform_9(%arg0: i32) -> (i32, i32, i32) {
    %c0_i32 = arith.constant 0 : i32
    %c0_i32_0 = arith.constant 0 : i32
    %c0_i32_1 = arith.constant 0 : i32
    return %arg0, %c0_i32, %c0_i32_0 : i32, i32, i32
  }
}

</mosaic_0001>

<bundles_post_ra>
// kernel: tpu_custom_call.1
= control target key start
LH: loop header
LB: loop body
LE: loop exit
PB: predicated region body
PF: predicated region fallthrough
CT: control target
= control target key end

     0   :  { %14 = vsyncpa [#allocation4], 0  ;;  %s2309_s0 = inlined_call_operand.vmem [shape: f32[2,8,32], index: 0, kind: input, shape index: {}]   ;;  %s2310_s1 = inlined_call_operand.vmem [shape: f32[8,4], index: 1, kind: input, shape index: {}]   ;;  %s2311_s2 = inlined_call_operand.vmem [shape: f32[8,4], index: 2, kind: input, shape index: {}]   ;;  %s2312_s3 = inlined_call_operand.vmem [shape: f32[1,32], index: 3, kind: input, shape index: {}]   ;;  %s2313_s4 = inlined_call_operand.vmem [shape: f32[1,32], index: 4, kind: input, shape index: {}]   ;;  %s2314_s5 = inlined_call_operand.vmem [shape: bf16[32,96], index: 5, kind: input, shape index: {}]   ;;  %s2315_s6 = inlined_call_operand.vmem [shape: bf16[32,32], index: 6, kind: input, shape index: {}]   ;;  %s2316_s7 = inlined_call_operand.vmem [shape: bf16[32,256], index: 7, kind: input, shape index: {}]   ;;  %s2317_s8 = inlined_call_operand.vmem [shape: bf16[128,32], index: 8, kind: input, shape index: {}]   ;;  %s2318_s9 = inlined_call_operand.hbm [shape: f32[2,8,32], index: 9, kind: output, shape index: {}]  }
   0x1   :  { %16 = vsyncpa [#allocation4 + $0x1], 0  ;;  %s1940_s30 = smov 0   ;;  %s1942_s10 = smov 0  }
   0x2   :  { %s1944_s11 = smov 0   ;;  %s1946_s12 = smov 0  }
   0x3 LB: > { %s1961_s13 = sadd.s32 4294967295, %s1853_s12   ;;  %s1515_s14 = sadd.s32 4294967294, %s1853_s12   ;;  %s1853_s12 = sphi %s1946_s12, %s2324_s12   ;;  %s1849_s11 = sphi %s1944_s11, %s2323_s11   ;;  %s1845_s10 = sphi %s1942_s10, %s2322_s10   ;;  %s1841_s30 = sphi %s1940_s30, %s2321_s30  }
   0x4   : > { %s1965_s15 = sadd.s32 1, %s1853_s12   ;;  %s223_s16 = sadd.s32 1, %s1849_s11 }
   0x5   : > { %s220_s17 = ssub.s32 %s1853_s12, %s1965_s15  ;;  %p233_p0 = scmp.ne.s32.totalorder %s1849_s11, %s1845_s10 }
   0x6   : > { %p221_p1 = scmp.eq.s32.totalorder %s220_s17, 0  ;;  %p234_p2 = scmp.eq.s32.totalorder %s1961_s13, 1 }
   0x7   : > { %p239_p3 = scmp.ne.s32.totalorder %s1845_s10, %s1841_s30  ;;  %p240_p4 = scmp.eq.s32.totalorder %s1515_s14, 1 }
   0x8   : > { %s1976_s18 = scalar_select %p221_p1, %s1849_s11, %s223_s16  }
   0x9   : > { %p1978_p5 = por %p234_p2, %p233_p0  ;;  %p1982_p6 = por %p240_p4, %p239_p3 }
   0xa   : > { %p1518_p7 = scmp.ge.s32.totalorder %s1853_s12, 1  ;;  %p289_p8 = scmp.lt.s32.totalorder %s1853_s12, 3 }
   0xc   : > { %p290_p9 = pnand %p1518_p7, %p289_p8 }
   0xd   : > { %p324_p10 = scmp.lt.s32.totalorder (!%p290_p9), %s1961_s13, 1  ;;  %s1858_s23 = smov (!%p290_p9), 4  }
   0xe   : > { %293 = sbr.rel (%p290_p9) target bundleno = 2160 (0x870), region = 56  ;;  %s1859_s24 = smov (!%p290_p9), 52  }
   0xf   : > { %s1861_s26 = smov (!%p290_p9), 20   ;;  %s1862_s27 = smov (!%p290_p9), 60  }
  0x10   : > { %s1863_s28 = smov (!%p290_p9), 12   ;;  %s1864_s29 = smov (!%p290_p9), 28  }
  0x11   : > { %s1865_s14 = smov (!%p290_p9), 32   ;;  %s1866_s16 = smov (!%p290_p9), 40  }
  0x12   : > { %s1867_s17 = smov (!%p290_p9), 8  }
  0x13   : > { %s325_s21 = scalar_select %p324_p10, %s1961_s13, 1  ;;  %vm331_vm0 = vcmask 261120   ;;  %v1743_v3 = vld [vmem:[%s2314_s5 + $0x8] sm:$0xff]   ;;  %v1855_v4 = vmov 0.0   ;;  %vm1856_vm1 = vmmov 0   ;;  %v1744_v5 = vld [vmem:[%s2314_s5] sm:$0xff]  }
  0x14   : > { %1586 = vmatprep.subr.bf16.mxu0 %v1855_v4  ;;  %1590 = vmatprep.mubr.msk.bf16.mxu0 %vm1856_vm1, %v1855_v4  ;;  %v2015_v6 = vld [vmem:[%s2310_s1] sm:$0xff]  ;;  %vm439_vm2 = vcmask 31744   ;;  %vm478_vm3 = vcmask 64512   ;;  %vm553_vm5 = vcmask 1043456   ;;  %vm792_vm6 = vcmask 130112  }
  0x15   : > { %s1520_s22 = sshll.u32 %s325_s21, 3  ;;  %1587 = vmatpush3.bf16.msra.mxu0 %v1743_v3  ;;  %1606 = vmatprep.subr.bf16.mxu1 %v1855_v4  ;;  %v2020_v7 = vld [vmem:[%s2311_s2] sm:$0xff]  ;;  %s1868_s21 = smov 48   ;;  %vm985_vm7 = vcmask 195712   ;;  %vm1178_vm8 = vcmask 261312  }
  0x16   : > { %s327_s25 = scalar_lea.vmem %s2309_s0, %s1520_s22  ;;  %1588 = vmatprep.subr.bf16.mxu0 %v1855_v4  ;;  %1608 = vmatprep.mubr.msk.bf16.mxu1 %vm1856_vm1, %v1855_v4  ;;  %s1857_s22 = smov 36   ;;  %v1521_v12 = vld [vmem:[%s2312_s3] ss:$0 sm:$0xff] }
  0x17   : > { %v1993_v0 = vld [vmem:[%s327_s25] sm:$0xff]  ;;  %459 = vrot.lane.b32.xlu1 %v2015_v6, %s1857_s22  ;;  %s1860_s25 = smov 44  }
  0x18   : > { %v330_v1 = vmul.f32 %v1993_v0, %v1993_v0 }
  0x19   : > { %1589 = vmatpush3.bf16.msra.mxu0 %v1744_v5 }
  0x1a   : > { %v332_v2 = vsel %vm331_vm0, %v330_v1, 0.0  ;;  %1594 = vmatprep.subr.bf16.mxu0 %v1855_v4 }
  0x1b   : > { %333 = vadd.xlane.f32.xlu0 %v332_v2  ;;  %426 = vrot.lane.b32.xlu1 %v2015_v6, %s1858_s23 }
  0x1f   : > { %641 = vrot.lane.b32.xlu1 %v2020_v7, %s1860_s25 }
  0x23   : > { %654 = vrot.lane.b32.xlu1 %v2015_v6, %s1860_s25  ;;  %s1875_s25 = smov 88  }
  0x27   : > { %605 = vrot.lane.b32.xlu1 %v2020_v7, %s1863_s28 }
  0x2b   : > { %618 = vrot.lane.b32.xlu1 %v2015_v6, %s1863_s28  ;;  %s1872_s28 = smov 24  }
  0x2f   : > { %834 = vrot.lane.b32.xlu1 %v2020_v7, %s1859_s24 }
  0x31   : > { %446 = vrot.lane.b32.xlu0 %v2020_v7, %s1857_s22  ;;  %s1869_s22 = smov 16  }
  0x33   : > { %798 = vrot.lane.b32.xlu1 %v2020_v7, %s1861_s26 }
  0x35   : > { %847 = vrot.lane.b32.xlu0 %v2015_v6, %s1859_s24  ;;  %s1870_s24 = smov 56  }
  0x37   : > { %1027 = vrot.lane.b32.xlu1 %v2020_v7, %s1862_s27 }
  0x39   : > { %811 = vrot.lane.b32.xlu0 %v2015_v6, %s1861_s26  ;;  %s1876_s26 = smov 92  }
  0x3b   : > { %991 = vrot.lane.b32.xlu1 %v2020_v7, %s1864_s29 }
  0x3d   : > { %1040 = vrot.lane.b32.xlu0 %v2015_v6, %s1862_s27  ;;  %s1871_s27 = smov 124  }
  0x3f   : > { %442 = vrot.lane.b32.xlu1 %v2015_v6, %s1865_s14 }
  0x41   : > { %1004 = vrot.lane.b32.xlu0 %v2015_v6, %s1864_s29  ;;  %s1873_s29 = smov 96  }
  0x43   : > { %415 = vrot.lane.b32.xlu1 %v2020_v7, %s1858_s23 }
  0x45   : > { %455 = vrot.lane.b32.xlu0 %v2020_v7, %s1865_s14  ;;  %s1874_s14 = smov 100  }
  0x47   : > { %650 = vrot.lane.b32.xlu1 %v2020_v7, %s1866_s16 }
  0x49   : > { %637 = vrot.lane.b32.xlu0 %v2015_v6, %s1866_s16 }
  0x4b   : > { %601 = vrot.lane.b32.xlu1 %v2015_v6, %s1867_s17 }
  0x4d   : > { %614 = vrot.lane.b32.xlu0 %v2020_v7, %s1867_s17 }
  0x4f   : > { %830 = vrot.lane.b32.xlu1 %v2015_v6, %s1868_s21 }
  0x51   : > { %843 = vrot.lane.b32.xlu0 %v2020_v7, %s1868_s21 }
  0x53   : > { %794 = vrot.lane.b32.xlu1 %v2015_v6, %s1869_s22 }
  0x55   : > { %807 = vrot.lane.b32.xlu0 %v2020_v7, %s1869_s22 }
  0x59   : > { %1036 = vrot.lane.b32.xlu0 %v2020_v7, %s1870_s24 }
  0x89   : > { %v460_v16 = vpop.permute.xlu1 %459 }
  0x8d   : > { %v427_v17 = vpop.permute.xlu1 %426 }
  0x91   : > { %v642_v18 = vpop.permute.xlu1 %641 }
  0x95   : > { %v655_v19 = vpop.permute.xlu1 %654 }
  0x99   : > { %v606_v21 = vpop.permute.xlu1 %605 }
  0x9d   : > { %v619_v28 = vpop.permute.xlu1 %618 }
  0xa1   : > { %v835_v32 = vpop.permute.xlu1 %834 }
  0xa4   : > { %v334_v8 = vpop.xlane.xlu0 %333 }
  0xa5   : > { %v336_v9 = vmul.f32 0.03125, %v334_v8  ;;  %v799_v38 = vpop.permute.xlu1 %798 }
  0xa7   : > { %v337_v10 = vadd.f32 1e-06, %v336_v9 }
  0xa8   : > { %v447_v20 = vpop.permute.xlu0 %446 }
  0xa9   : > { %1761 = vrsqrt.f32 %v337_v10  ;;  %v1028_v42 = vpop.permute.xlu1 %1027 }
  0xac   : > { %v848_v33 = vpop.permute.xlu0 %847 }
  0xad   : > { %v992_v46 = vpop.permute.xlu1 %991 }
  0xb0   : > { %v812_v39 = vpop.permute.xlu0 %811 }
  0xb1   : > { %v443_v50 = vpop.permute.xlu1 %442 }
  0xb4   : > { %v1041_v43 = vpop.permute.xlu0 %1040 }
  0xb5   : > { %v416_v52 = vpop.permute.xlu1 %415 }
  0xb6   : > { %v1762_v11 = vpop.eup %1761 }
  0xb7   : > { %v339_v13 = vmul.f32 %v1762_v11, %v1993_v0 }
  0xb8   : > { %v1005_v47 = vpop.permute.xlu0 %1004 }
  0xb9   : > { %v347_v14 = vmul.f32 %v1521_v12, %v339_v13  ;;  %v651_v54 = vpop.permute.xlu1 %650 }
  0xbb   : > { %v348_v15 = vpack.c.bf16 %v347_v14, %v347_v14 }
  0xbc   : > { %v456_v51 = vpop.permute.xlu0 %455 }
  0xbd   : > { %1591 = vmatmul.mubr.msk.bf16.vlgmr.msra.gmra.mxu0 %vm331_vm0, %v348_v15  ;;  %v602_v56 = vpop.permute.xlu1 %601 }
  0xbe   : > { %1596 = vmatprep.mubr.msk.bf16.mxu0 %vm1856_vm1, %v1855_v4 }
  0xc0   : > { %v638_v53 = vpop.permute.xlu0 %637 }
  0xc1   : > { %v831_v58 = vpop.permute.xlu1 %830 }
  0xc4   : > { %v615_v55 = vpop.permute.xlu0 %614 }
  0xc5   : > { %v795_v60 = vpop.permute.xlu1 %794 }
  0xc8   : > { %v844_v57 = vpop.permute.xlu0 %843 }
  0xcc   : > { %v808_v59 = vpop.permute.xlu0 %807 }
  0xd0   : > { %v1037_v61 = vpop.permute.xlu0 %1036 }
 0x17d   : > { %v2067_v22 = vpop.f32.mrf.mxu0 }
 0x17e   : > { %v462_v23 = vmul.f32 %v460_v16, %v2067_v22  ;;  %v449_v24 = vmul.f32 %v447_v20, %v2067_v22  ;;  %v429_v27 = vmul.f32 %v427_v17, %v2067_v22  ;;  %v657_v30 = vmul.f32 %v655_v19, %v2067_v22 }
 0x17f   : > { %v1592_v25 = vpop.f32.mrf.mxu0  ;;  %v644_v31 = vmul.f32 %v642_v18, %v2067_v22  ;;  %v621_v34 = vmul.f32 %v619_v28, %v2067_v22  ;;  %v608_v35 = vmul.f32 %v606_v21, %v2067_v22  ;;  %v837_v36 = vmul.f32 %v835_v32, %v2067_v22 }
 0x180   : > { %464 = vrot.lane.b32.xlu0 %v462_v23, %s1871_s27  ;;  %451 = vrot.lane.b32.xlu1 %v449_v24, %s1871_s27  ;;  %v850_v37 = vmul.f32 %v848_v33, %v2067_v22  ;;  %v801_v40 = vmul.f32 %v799_v38, %v2067_v22  ;;  %v814_v41 = vmul.f32 %v812_v39, %v2067_v22 }
 0x181   : > { %v405_v26 = vpop.f32.mrf.mxu0  ;;  %v1030_v44 = vmul.f32 %v1028_v42, %v2067_v22  ;;  %v1043_v45 = vmul.f32 %v1041_v43, %v2067_v22  ;;  %v994_v48 = vmul.f32 %v992_v46, %v2067_v22  ;;  %v1007_v49 = vmul.f32 %v1005_v47, %v2067_v22 }
 0x182   : > { %v445_v62 = vmul.f32 %v443_v50, %v2067_v22  ;;  %v458_v63 = vmul.f32 %v456_v51, %v2067_v22  ;;  %v424_v8 = vmul.f32 %v2020_v7, %v2067_v22  ;;  %v418_v12 = vmul.f32 %v416_v52, %v2067_v22 }
 0x183   : > { %v1593_v29 = vpop.f32.mrf.mxu0  ;;  %v640_v13 = vmul.f32 %v638_v53, %v2067_v22  ;;  %v653_v14 = vmul.f32 %v651_v54, %v2067_v22  ;;  %v617_v19 = vmul.f32 %v615_v55, %v2067_v22  ;;  %v833_v25 = vmul.f32 %v831_v58, %v2067_v22 }
 0x184   : > { %431 = vrot.lane.b32.xlu0 %v429_v27, %s1871_s27  ;;  %1023 = vrot.lane.b32.xlu1 %v2015_v6, %s1870_s24  ;;  %v846_v26 = vmul.f32 %v844_v57, %v2067_v22  ;;  %v810_v32 = vmul.f32 %v808_v59, %v2067_v22  ;;  %v413_v55 = vmul.f32 %v2015_v6, %v2067_v22 }
 0x188   : > { %659 = vrot.lane.b32.xlu0 %v657_v30, %s1871_s27  ;;  %646 = vrot.lane.b32.xlu1 %v644_v31, %s1871_s27  ;;  %v797_v31 = vmul.f32 %v795_v60, %v2067_v22 }
 0x18c   : > { %623 = vrot.lane.b32.xlu0 %v621_v34, %s1871_s27  ;;  %610 = vrot.lane.b32.xlu1 %v608_v35, %s1871_s27 }
 0x190   : > { %839 = vrot.lane.b32.xlu1 %v837_v36, %s1871_s27  ;;  %852 = vrot.lane.b32.xlu0 %v850_v37, %s1871_s27  ;;  %v1039_v37 = vmul.f32 %v1037_v61, %v2067_v22 }
 0x194   : > { %803 = vrot.lane.b32.xlu1 %v801_v40, %s1871_s27  ;;  %816 = vrot.lane.b32.xlu0 %v814_v41, %s1871_s27 }
 0x198   : > { %1032 = vrot.lane.b32.xlu1 %v1030_v44, %s1871_s27  ;;  %1045 = vrot.lane.b32.xlu0 %v1043_v45, %s1871_s27 }
 0x19c   : > { %987 = vrot.lane.b32.xlu1 %v2015_v6, %s1872_s28  ;;  %1000 = vrot.lane.b32.xlu0 %v2020_v7, %s1872_s28  ;;  %v604_v7 = vmul.f32 %v602_v56, %v2067_v22 }
 0x1a0   : > { %996 = vrot.lane.b32.xlu1 %v994_v48, %s1871_s27  ;;  %1009 = vrot.lane.b32.xlu0 %v1007_v49, %s1871_s27 }
 0x1f2   : > { %v452_v1 = vpop.permute.xlu1 %451  ;;  %v465_v2 = vpop.permute.xlu0 %464 }
 0x1f3   : > { %v454_v3 = vsub.f32 %v445_v62, %v452_v1  ;;  %v467_v5 = vadd.f32 %v465_v2, %v458_v63 }
 0x1f5   : > { %469 = vrot.lane.b32.xlu1 %v454_v3, %s1873_s29  ;;  %473 = vrot.lane.b32.xlu0 %v467_v5, %s1874_s14  ;;  %s1878_s29 = smov 80   ;;  %s1879_s14 = smov 84  }
 0x1f6   : > { %v1024_v9 = vpop.permute.xlu1 %1023  ;;  %v432_v10 = vpop.permute.xlu0 %431 }
 0x1f7   : > { %v434_v11 = vadd.f32 %v432_v10, %v424_v8  ;;  %v1026_v38 = vmul.f32 %v1024_v9, %v2067_v22 }
 0x1f9   : > { %420 = vrot.lane.b32.xlu1 %v418_v12, %s1871_s27  ;;  %436 = vrot.lane.b32.xlu0 %v434_v11, %s1858_s23  ;;  %s1877_s23 = smov 120  }
 0x1fa   : > { %v647_v15 = vpop.permute.xlu1 %646  ;;  %v660_v16 = vpop.permute.xlu0 %659 }
 0x1fb   : > { %v649_v17 = vsub.f32 %v640_v13, %v647_v15  ;;  %v662_v18 = vadd.f32 %v660_v16, %v653_v14 }
 0x1fd   : > { %664 = vrot.lane.b32.xlu1 %v649_v17, %s1875_s25  ;;  %668 = vrot.lane.b32.xlu0 %v662_v18, %s1876_s26  ;;  %s1881_s25 = smov 116   ;;  %s1882_s26 = smov 72  }
 0x1fe   : > { %v611_v20 = vpop.permute.xlu1 %610  ;;  %v624_v21 = vpop.permute.xlu0 %623 }
 0x1ff   : > { %v613_v23 = vsub.f32 %v604_v7, %v611_v20  ;;  %v626_v24 = vadd.f32 %v624_v21, %v617_v19 }
 0x201   : > { %628 = vrot.lane.b32.xlu1 %v613_v23, %s1877_s23  ;;  %632 = vrot.lane.b32.xlu0 %v626_v24, %s1871_s27  ;;  %s1880_s27 = smov 112   ;;  %s1883_s23 = smov 76  }
 0x202   : > { %v840_v27 = vpop.permute.xlu1 %839  ;;  %v853_v28 = vpop.permute.xlu0 %852 }
 0x203   : > { %v842_v29 = vsub.f32 %v833_v25, %v840_v27  ;;  %v855_v30 = vadd.f32 %v853_v28, %v846_v26  ;;  %v410_v28 = vlaneseq }
 0x205   : > { %857 = vrot.lane.b32.xlu1 %v842_v29, %s1878_s29  ;;  %861 = vrot.lane.b32.xlu0 %v855_v30, %s1879_s14  ;;  %s1884_s29 = smov 104   ;;  %s1885_s14 = smov 108   ;;  %v411_v29 = vshrl.u32 %v410_v28, 7  ;;  %v527_v30 = vand.u32 127, %v410_v28 }
 0x206   : > { %v804_v33 = vpop.permute.xlu1 %803  ;;  %v817_v34 = vpop.permute.xlu0 %816 }
 0x207   : > { %v806_v35 = vsub.f32 %v797_v31, %v804_v33  ;;  %v819_v36 = vadd.f32 %v817_v34, %v810_v32  ;;  %vm528_vm4 = vcmp.le.s32.totalorder %v527_v30, %v411_v29  ;;  %v1886_v32 = vmov -1e+09  }
 0x208   : > { %v529_v33 = vsel %vm528_vm4, 0.0, %v1886_v32 }
 0x209   : > { %821 = vrot.lane.b32.xlu1 %v806_v35, %s1880_s27  ;;  %825 = vrot.lane.b32.xlu0 %v819_v36, %s1881_s25  ;;  %s1887_s27 = smov 64   ;;  %s321_s25 = sand.u32 1, %s1845_s10  }
 0x20a   : > { %v1033_v39 = vpop.permute.xlu1 %1032  ;;  %v1046_v40 = vpop.permute.xlu0 %1045 }
 0x20b   : > { %v1035_v41 = vsub.f32 %v1026_v38, %v1033_v39  ;;  %v1048_v42 = vadd.f32 %v1046_v40, %v1039_v37 }
 0x20d   : > { %1050 = vrot.lane.b32.xlu1 %v1035_v41, %s1882_s26  ;;  %1054 = vrot.lane.b32.xlu0 %v1048_v42, %s1883_s23  ;;  %s1519_s26 = sshll.u32 %s321_s25, 3  ;;  %s1552_s23 = sshll.u32 %s1961_s13, 7 }
 0x20e   : > { %v988_v43 = vpop.permute.xlu1 %987  ;;  %v1001_v44 = vpop.permute.xlu0 %1000  ;;  %s1443_s13 = scalar_lea.sflag [#allocation4], %s321_s25 }
 0x20f   : > { %v990_v45 = vmul.f32 %v988_v43, %v2067_v22  ;;  %v1003_v46 = vmul.f32 %v1001_v44, %v2067_v22 }
 0x212   : > { %v997_v47 = vpop.permute.xlu1 %996  ;;  %v1010_v48 = vpop.permute.xlu0 %1009 }
 0x213   : > { %v999_v49 = vsub.f32 %v990_v45, %v997_v47  ;;  %v1012_v50 = vadd.f32 %v1010_v48, %v1003_v46 }
 0x215   : > { %1014 = vrot.lane.b32.xlu1 %v999_v49, %s1884_s29  ;;  %1018 = vrot.lane.b32.xlu0 %v1012_v50, %s1885_s14  ;;  %s323_s29 = scalar_lea.vmem [#allocation3], %s1519_s26 }
 0x216   : > { %s1456_s14 = sshll.u32 %s323_s29, 4  ;;  %s2269_s14 = int_to_ptr.vmem [resolvable:$true] %s1456_s14 }
 0x267   : > { %v470_v51 = vpop.permute.xlu1 %469  ;;  %v474_v52 = vpop.permute.xlu0 %473 }
 0x268   : > { %v476_v53 = vsel %vm439_vm2, %v470_v51, %v474_v52 }
 0x269   : > { %v477_v54 = vpack.c.bf16 %v476_v53, %v476_v53  ;;  %v412_v53 = vpack.c.bf16 %v2067_v22, %v2067_v22 }
 0x26b   : > { %v421_v56 = vpop.permute.xlu1 %420  ;;  %v437_v57 = vpop.permute.xlu0 %436  ;;  %v483_v58 = vsel %vm478_vm3, %v477_v54, 0 }
 0x26c   : > { %v423_v59 = vsub.f32 %v413_v55, %v421_v56  ;;  %1595 = vmatpush3.bf16.xpose.msra.mxu0 %v483_v58 }
 0x26d   : > { %1600 = vmatprep.subr.bf16.mxu0 %v1855_v4 }
 0x26e   : > { %v440_v60 = vsel %vm439_vm2, %v423_v59, %v437_v57 }
 0x26f   : > { %v665_v61 = vpop.permute.xlu1 %664  ;;  %v669_v62 = vpop.permute.xlu0 %668  ;;  %v441_v1 = vpack.c.bf16 %v440_v60, %v440_v60 }
 0x270   : > { %v671_v63 = vsel %vm439_vm2, %v665_v61, %v669_v62 }
 0x271   : > { %v672_v2 = vpack.c.bf16 %v671_v63, %v671_v63 }
 0x273   : > { %v629_v3 = vpop.permute.xlu1 %628  ;;  %1597 = vmatmul.mubr.msk.bf16.vlgmr.msra.gmra.mxu0 %vm478_vm3, %v441_v1  ;;  %v633_v6 = vpop.permute.xlu0 %632  ;;  %v677_v5 = vsel %vm478_vm3, %v672_v2, 0 }
 0x274   : > { %1607 = vmatpush3.bf16.xpose.msra.mxu1 %v677_v5  ;;  %1602 = vmatprep.mubr.msk.bf16.mxu0 %vm1856_vm1, %v1855_v4  ;;  %v635_v8 = vsel %vm439_vm2, %v629_v3, %v633_v6 }
 0x275   : > { %1618 = vmatprep.subr.bf16.mxu1 %v1855_v4  ;;  %v636_v12 = vpack.c.bf16 %v635_v8, %v635_v8 }
 0x277   : > { %v858_v9 = vpop.permute.xlu1 %857  ;;  %v862_v10 = vpop.permute.xlu0 %861 }
 0x278   : > { %v864_v11 = vsel %vm439_vm2, %v858_v9, %v862_v10 }
 0x279   : > { %v865_v13 = vpack.c.bf16 %v864_v11, %v864_v11 }
 0x27b   : > { %v822_v14 = vpop.permute.xlu1 %821  ;;  %1609 = vmatmul.mubr.msk.bf16.vlgmr.msra.gmra.mxu1 %vm478_vm3, %v636_v12  ;;  %v826_v15 = vpop.permute.xlu0 %825  ;;  %v870_v16 = vsel %vm478_vm3, %v865_v13, 0 }
 0x27c   : > { %1619 = vmatpush3.bf16.xpose.msra.mxu1 %v870_v16  ;;  %1620 = vmatprep.mubr.msk.bf16.mxu1 %vm1856_vm1, %v1855_v4  ;;  %v828_v17 = vsel %vm439_vm2, %v822_v14, %v826_v15 }
 0x27d   : > { %1630 = vmatprep.subr.bf16.mxu1 %v1855_v4  ;;  %v829_v20 = vpack.c.bf16 %v828_v17, %v828_v17 }
 0x27f   : > { %v1051_v18 = vpop.permute.xlu1 %1050  ;;  %v1055_v7 = vpop.permute.xlu0 %1054 }
 0x280   : > { %v1057_v19 = vsel %vm439_vm2, %v1051_v18, %v1055_v7 }
 0x281   : > { %v1058_v21 = vpack.c.bf16 %v1057_v19, %v1057_v19 }
 0x283   : > { %1621 = vmatmul.mubr.msk.bf16.vlgmr.msra.gmra.mxu1 %vm478_vm3, %v829_v20  ;;  %v1063_v23 = vsel %vm478_vm3, %v1058_v21, 0 }
 0x284   : > { %1631 = vmatpush3.bf16.xpose.msra.mxu1 %v1063_v23  ;;  %1632 = vmatprep.mubr.msk.bf16.mxu1 %vm1856_vm1, %v1855_v4 }
 0x285   : > { %1642 = vmatprep.subr.bf16.mxu1 %v1855_v4 }
 0x287   : > { %v1015_v24 = vpop.permute.xlu1 %1014  ;;  %v1019_v25 = vpop.permute.xlu0 %1018 }
 0x288   : > { %v1021_v26 = vsel %vm439_vm2, %v1015_v24, %v1019_v25 }
 0x289   : > { %v1022_v27 = vpack.c.bf16 %v1021_v26, %v1021_v26 }
 0x28b   : > { %1633 = vmatmul.mubr.msk.bf16.vlgmr.msra.gmra.mxu1 %vm478_vm3, %v1022_v27 }
 0x28c   : > { %1646 = vmatprep.mubr.msk.bf16.mxu1 %vm1856_vm1, %v1855_v4 }
 0x333   : > { %v519_v31 = vpop.f32.mrf.mxu0 }
 0x334   : > { %v525_v34 = vmul.f32 0.35355338, %v519_v31 }
 0x335   : > { %v1598_v35 = vpop.f32.mrf.mxu0 }
 0x336   : > { %v530_v36 = vadd.f32 %v529_v33, %v525_v34 }
 0x337   : > { %v522_v37 = vpop.f32.mrf.mxu0 }
 0x338   : > { %v531_v38 = vsel %vm478_vm3, %v530_v36, -inf }
 0x339   : > { %532 = vmax.xlane.f32.xlu1 %v531_v38  ;;  %v1599_v39 = vpop.f32.mrf.mxu0 }
 0x33b   : > { %v713_v40 = vpop.f32.mrf.mxu1 }
 0x33c   : > { %v719_v41 = vmul.f32 0.35355338, %v713_v40 }
 0x33d   : > { %v1610_v42 = vpop.f32.mrf.mxu1 }
 0x33e   : > { %v720_v43 = vadd.f32 %v719_v41, %v529_v33 }
 0x33f   : > { %v716_v44 = vpop.f32.mrf.mxu1 }
 0x340   : > { %v721_v45 = vsel %vm478_vm3, %v720_v43, -inf }
 0x341   : > { %722 = vmax.xlane.f32.xlu0 %v721_v45  ;;  %v1611_v46 = vpop.f32.mrf.mxu1 }
 0x343   : > { %v906_v47 = vpop.f32.mrf.mxu1 }
 0x344   : > { %v912_v48 = vmul.f32 0.35355338, %v906_v47 }
 0x345   : > { %v1622_v49 = vpop.f32.mrf.mxu1 }
 0x346   : > { %v913_v50 = vadd.f32 %v912_v48, %v529_v33 }
 0x347   : > { %v909_v51 = vpop.f32.mrf.mxu1 }
 0x348   : > { %v914_v52 = vsel %vm478_vm3, %v913_v50, -inf }
 0x349   : > { %915 = vmax.xlane.f32.xlu0 %v914_v52  ;;  %v1623_v54 = vpop.f32.mrf.mxu1 }
 0x34a   : > { %737 = vrot.lane.b32.xlu1 %v412_v53, %s1870_s24  ;;  %s1889_s24 = smov [#allocation3]  }
 0x34b   : > { %v1099_v55 = vpop.f32.mrf.mxu1 }
 0x34c   : > { %v1105_v59 = vmul.f32 0.35355338, %v1099_v55 }
 0x34d   : > { %v1634_v56 = vpop.f32.mrf.mxu1 }
 0x34e   : > { %v1106_v60 = vadd.f32 %v1105_v59, %v529_v33 }
 0x34f   : > { %v1102_v57 = vpop.f32.mrf.mxu1 }
 0x350   : > { %v1107_v61 = vsel %vm478_vm3, %v1106_v60, -inf }
 0x351   : > { %v1635_v58 = vpop.f32.mrf.mxu1 }
 0x35f   : > { %548 = vrot.lane.b32.xlu0 %v412_v53, %s1887_s27 }
 0x363   : > { %1123 = vrot.lane.b32.xlu0 %v412_v53, %s1866_s16 }
 0x36e   : > { %1108 = vmax.xlane.f32.xlu1 %v1107_v61 }
 0x37f   : > { %930 = vrot.lane.b32.xlu1 %v412_v53, %s1868_s21  ;;  %s1793_s21 = scalar_lea.vmem %s2269_s14, 128 }
 0x380   : > { %p1794_p11 = scmp.ne.s32.totalorder %s2269_s14, %s1793_s21 }
 0x382   : > { %p1795_p12 = pnand %p1794_p11, %p1978_p5 }
 0x384   : > { %p1796_p13 = pneg %p1795_p12 }
 0x3c2   : > { %v533_v22 = vpop.xlane.xlu1 %532 }
 0x3c3   : > { %v534_v62 = vmax.f32 %v533_v22, -1e+30 }
 0x3c5   : > { %v538_v63 = vsub.f32 %v530_v36, %v534_v62  ;;  %v535_v36 = vsub.f32 -1e+30, %v534_v62 }
 0x3c6   : > { %v738_v15 = vpop.permute.xlu1 %737 }
 0x3c7   : > { %v539_v1 = vmul.f32 1.442695, %v538_v63  ;;  %v743_v17 = vsel %vm553_vm5, %v738_v15, 0  ;;  %v536_v37 = vmul.f32 1.442695, %v535_v36 }
 0x3c9   : > { %1763 = vpow2.f32 %v539_v1 }
 0x3ca   : > { %v723_v2 = vpop.xlane.xlu0 %722 }
 0x3cb   : > { %v724_v3 = vmax.f32 %v723_v2, -1e+30 }
 0x3cd   : > { %v728_v6 = vsub.f32 %v720_v43, %v724_v3  ;;  %v725_v38 = vsub.f32 -1e+30, %v724_v3 }
 0x3cf   : > { %v729_v5 = vmul.f32 1.442695, %v728_v6  ;;  %v726_v39 = vmul.f32 1.442695, %v725_v38 }
 0x3d1   : > { %1765 = vpow2.f32 %v729_v5 }
 0x3d2   : > { %v2164_v8 = vpop.xlane.xlu0 %915 }
 0x3d3   : > { %v917_v9 = vmax.f32 %v2164_v8, -1e+30 }
 0x3d5   : > { %v921_v10 = vsub.f32 %v913_v50, %v917_v9  ;;  %v918_v48 = vsub.f32 -1e+30, %v917_v9 }
 0x3d6   : > { %v549_v11 = vpop.permute.xlu0 %548  ;;  %v1764_v12 = vpop.eup %1763 }
 0x3d7   : > { %v922_v13 = vmul.f32 1.442695, %v921_v10  ;;  %v555_v14 = vsel %vm553_vm5, %v549_v11, 0  ;;  %v546_v16 = vpack.c.bf16 %v1764_v12, %v1764_v12  ;;  %v542_v20 = vsel %vm478_vm3, %v1764_v12, 0.0 }
 0x3d8   : > { %1601 = vmatpush3.bf16.msra.mxu0 %v555_v14  ;;  %v919_v49 = vmul.f32 1.442695, %v918_v48  ;;  %v1536_v48 = vld [vmem:[%s2313_s4] ss:$0 sm:$0xff] }
 0x3d9   : > { %1612 = vmatprep.subr.bf16.mxu0 %v1855_v4  ;;  %1767 = vpow2.f32 %v922_v13 }
 0x3da   : > { %v1124_v30 = vpop.permute.xlu0 %1123 }
 0x3db   : > { %1603 = vmatmul.mubr.msk.bf16.vlgmr.msra.gmra.mxu0 %vm478_vm3, %v546_v16  ;;  %v1129_v32 = vsel %vm553_vm5, %v1124_v30, 0 }
 0x3dc   : > { %1613 = vmatpush3.bf16.msra.mxu0 %v743_v17  ;;  %1614 = vmatprep.mubr.msk.bf16.mxu0 %vm1856_vm1, %v1855_v4 }
 0x3dd   : > { %1624 = vmatprep.subr.bf16.mxu0 %v1855_v4 }
 0x3de   : > { %v1766_v18 = vpop.eup %1765 }
 0x3df   : > { %v732_v7 = vsel %vm478_vm3, %v1766_v18, 0.0  ;;  %v736_v19 = vpack.c.bf16 %v1766_v18, %v1766_v18 }
 0x3e0   : > { %733 = vadd.xlane.f32.xlu1 %v732_v7  ;;  %v1745_v7 = vld [vmem:[%s2315_s6 + $0x8] sm:$0xff]  }
 0x3e1   : > { %1643 = vmatpush3.bf16.msra.mxu1 %v1745_v7 }
 0x3e2   : > { %1644 = vmatprep.subr.bf16.mxu1 %v1855_v4 }
 0x3e3   : > { %1615 = vmatmul.mubr.msk.bf16.vlgmr.msra.gmra.mxu0 %vm478_vm3, %v736_v19  ;;  %v1746_v19 = vld [vmem:[%s2315_s6] sm:$0xff]  }
 0x3e4   : > { %1626 = vmatprep.mubr.msk.bf16.mxu0 %vm1856_vm1, %v1855_v4  ;;  %543 = vadd.xlane.f32.xlu1 %v542_v20 }
 0x3e5   : > { %1645 = vmatpush3.bf16.msra.mxu1 %v1746_v19 }
 0x3e6   : > { %v1768_v21 = vpop.eup %1767  ;;  %1650 = vmatprep.subr.bf16.mxu1 %v1855_v4 }
 0x3e7   : > { %v925_v23 = vsel %vm478_vm3, %v1768_v21, 0.0  ;;  %v929_v31 = vpack.c.bf16 %v1768_v21, %v1768_v21 }
 0x3e8   : > { %926 = vadd.xlane.f32.xlu0 %v925_v23 }
 0x3f7   : > { %v1109_v24 = vpop.xlane.xlu1 %1108 }
 0x3f8   : > { %v1110_v25 = vmax.f32 %v1109_v24, -1e+30 }
 0x3fa   : > { %v1114_v26 = vsub.f32 %v1106_v60, %v1110_v25  ;;  %v1111_v61 = vsub.f32 -1e+30, %v1110_v25 }
 0x3fb   : > { %v931_v27 = vpop.permute.xlu1 %930 }
 0x3fc   : > { %v1115_v28 = vmul.f32 1.442695, %v1114_v26  ;;  %v936_v29 = vsel %vm553_vm5, %v931_v27, 0  ;;  %v1112_v1 = vmul.f32 1.442695, %v1111_v61 }
 0x3fd   : > { %1625 = vmatpush3.bf16.msra.mxu0 %v936_v29 }
 0x3fe   : > { %1636 = vmatprep.subr.bf16.mxu0 %v1855_v4  ;;  %1769 = vpow2.f32 %v1115_v28 }
 0x3ff   : > { %1771 = vpow2.f32 %v536_v37 }
 0x400   : > { %1627 = vmatmul.mubr.msk.bf16.vlgmr.msra.gmra.mxu0 %vm478_vm3, %v929_v31  ;;  %1773 = vpow2.f32 %v726_v39 }
 0x401   : > { %1637 = vmatpush3.bf16.msra.mxu0 %v1129_v32  ;;  %1638 = vmatprep.mubr.msk.bf16.mxu0 %vm1856_vm1, %v1855_v4 }
 0x40b   : > { %v1770_v33 = vpop.eup %1769 }
 0x40c   : > { %v1118_v34 = vsel %vm478_vm3, %v1770_v33, 0.0  ;;  %v1122_v35 = vpack.c.bf16 %v1770_v33, %v1770_v33  ;;  %v1772_v41 = vpop.eup %1771 }
 0x40d   : > { %1119 = vadd.xlane.f32.xlu0 %v1118_v34  ;;  %v541_v43 = vmul.f32 0.0, %v1772_v41  ;;  %v1774_v45 = vpop.eup %1773  ;;  %v1749_v41 = vld [vmem:[%s2316_s7 + $0x14] ss:$8 sps:$4 sm:$0xff]  }
 0x40e   : > { %1639 = vmatmul.mubr.msk.bf16.vlgmr.msra.gmra.mxu0 %vm478_vm3, %v1122_v35  ;;  %v731_v46 = vmul.f32 0.0, %v1774_v45  ;;  %1298 = vmatprep.subr.bf16.mxu0 %v1749_v41 }
 0x469   : > { %v734_v40 = vpop.xlane.xlu1 %733 }
 0x46a   : > { %v735_v47 = vadd.f32 %v734_v40, %v731_v46  ;;  %v1747_v40 = vld [vmem:[%s2316_s7 + $0x10] ss:$8 sps:$4 sm:$0xff]  }
 0x46b   : > { %1299 = vmatpush1.bf16.msra.mxu0 %v1747_v40 }
 0x46d   : > { %v544_v42 = vpop.xlane.xlu1 %543 }
 0x46e   : > { %v545_v44 = vadd.f32 %v544_v42, %v541_v43  ;;  %v1888_v42 = vmov 0  }
 0x46f   : > { %1318 = vmatprep.mubr.bf16.mxu0 %v1888_v42 }
 0x470   : > { %1775 = vrcp.f32 %v545_v44 }
 0x471   : > { %1777 = vrcp.f32 %v735_v47  ;;  %v927_v3 = vpop.xlane.xlu0 %926 }
 0x472   : > { %1779 = vpow2.f32 %v919_v49 }
 0x473   : > { %1781 = vpow2.f32 %v1112_v1 }
 0x47d   : > { %v1776_v52 = vpop.eup %1775 }
 0x47e   : > { %v1778_v59 = vpop.eup %1777 }
 0x47f   : > { %v1780_v2 = vpop.eup %1779 }
 0x480   : > { %v924_v6 = vmul.f32 0.0, %v1780_v2  ;;  %v1782_v8 = vpop.eup %1781 }
 0x481   : > { %v1117_v10 = vmul.f32 0.0, %v1782_v8 }
 0x482   : > { %v928_v5 = vadd.f32 %v927_v3, %v924_v6 }
 0x484   : > { %1783 = vrcp.f32 %v928_v5 }
 0x491   : > { %v1784_v14 = vpop.eup %1783 }
 0x496   : > { %v1120_v9 = vpop.xlane.xlu0 %1119 }
 0x497   : > { %v1121_v11 = vadd.f32 %v1120_v9, %v1117_v10 }
 0x499   : > { %1785 = vrcp.f32 %v1121_v11 }
 0x49b   : > { %v591_v50 = vpop.f32.mrf.mxu0 }
 0x49c   : > { %v597_v51 = vadd.f32 %v591_v50, %v541_v43  ;;  %v1750_v43 = vld [vmem:[%s2316_s7] ss:$8 sps:$4 sm:$0xff]  }
 0x49d   : > { %v1604_v53 = vpop.f32.mrf.mxu0 }
 0x49e   : > { %v599_v54 = vmul.f32 %v1776_v52, %v597_v51  ;;  %v1753_v52 = vld [vmem:[%s2317_s8 + $0x38] sm:$0xff]   ;;  %v1754_v53 = vld [vmem:[%s2317_s8 + $0x30] sm:$0xff]  }
 0x49f   : > { %v594_v55 = vpop.f32.mrf.mxu0 }
 0x4a0   : > { %600 = vst.msk [vmem:[#allocation2] sm:$0xff] %vm478_vm3, %v599_v54  ;;  %v1755_v54 = vld [vmem:[%s2317_s8 + $0x28] sm:$0xff]   ;;  %v1756_v55 = vld [vmem:[%s2317_s8 + $0x20] sm:$0xff]  }
 0x4a1   : > { %v1605_v56 = vpop.f32.mrf.mxu0 }
 0x4a2   : > { %v1757_v56 = vld [vmem:[%s2317_s8 + $0x18] sm:$0xff]  }
 0x4a3   : > { %v779_v57 = vpop.f32.mrf.mxu0 }
 0x4a4   : > { %v785_v58 = vadd.f32 %v779_v57, %v731_v46  ;;  %v1758_v57 = vld [vmem:[%s2317_s8 + $0x10] sm:$0xff]  }
 0x4a5   : > { %v1616_v60 = vpop.f32.mrf.mxu0 }
 0x4a6   : > { %v787_v22 = vmul.f32 %v1778_v59, %v785_v58  ;;  %v1786_v23 = vpop.eup %1785  ;;  %v1759_v58 = vld [vmem:[%s2317_s8 + $0x8] sm:$0xff]   ;;  %v1760_v59 = vld [vmem:[%s2317_s8] sm:$0xff]  }
 0x4a7   : > { %v782_v62 = vpop.f32.mrf.mxu0 }
 0x4a8   : > { %789 = vrot.lane.b32.xlu0 %v787_v22, %s1867_s17  ;;  %s2267_s17 = scalar_lea.hbm %s2318_s9, %s1552_s23 }
 0x4a9   : > { %v1617_v63 = vpop.f32.mrf.mxu0 }
 0x4c0   : > { %v972_v12 = vpop.f32.mrf.mxu0 }
 0x4c1   : > { %v978_v13 = vadd.f32 %v972_v12, %v924_v6 }
 0x4c2   : > { %v1628_v15 = vpop.f32.mrf.mxu0 }
 0x4c3   : > { %v980_v16 = vmul.f32 %v1784_v14, %v978_v13 }
 0x4c4   : > { %v975_v17 = vpop.f32.mrf.mxu0 }
 0x4c5   : > { %982 = vrot.lane.b32.xlu1 %v980_v16, %s1869_s22  ;;  %s1797_s22 = sshll.u32 %s1889_s24, 4  ;;  %s1798_s22 = int_to_ptr.vmem [resolvable:$false] %s1797_s22 }
 0x4c6   : > { %v1629_v18 = vpop.f32.mrf.mxu0  ;;  %p1800_p0 = scmp.lt.s32.totalorder %s2269_s14, %s1798_s22 }
 0x4ce   : > { %v1165_v20 = vpop.f32.mrf.mxu0 }
 0x4cf   : > { %v1171_v21 = vadd.f32 %v1165_v20, %v1117_v10 }
 0x4d0   : > { %v1640_v24 = vpop.f32.mrf.mxu0 }
 0x4d1   : > { %v1173_v25 = vmul.f32 %v1786_v23, %v1171_v21 }
 0x4d2   : > { %v1168_v26 = vpop.f32.mrf.mxu0 }
 0x4d3   : > { %1175 = vrot.lane.b32.xlu1 %v1173_v25, %s1872_s28  ;;  %s1799_s28 = scalar_lea.vmem %s1798_s22, 256 }
 0x4d4   : > { %v1641_v27 = vpop.f32.mrf.mxu0  ;;  %p1801_p1 = scmp.lt.s32.totalorder %s1799_s28, %s1793_s21 }
 0x4d6   : > { %p1802_p2 = por %p1801_p1, %p1800_p0 }
 0x4d8   : > { %p1803_p3 = pnand %p1802_p2, %p1796_p13 }
 0x51a   : > { %v790_v28 = vpop.permute.xlu0 %789 }
 0x51b   : > { %793 = vst.msk [vmem:[#allocation2] sm:$0xff] %vm792_vm6, %v790_v28 }
 0x537   : > { %v983_v29 = vpop.permute.xlu1 %982 }
 0x538   : > { %986 = vst.msk [vmem:[#allocation2] sm:$0xff] %vm985_vm7, %v983_v29 }
 0x545   : > { %v1176_v30 = vpop.permute.xlu1 %1175 }
 0x546   : > { %1179 = vst.msk [vmem:[#allocation2] sm:$0xff] %vm1178_vm8, %v1176_v30 }
 0x54d   : > { %v1180_v31 = vld [vmem:[#allocation2] sm:$0xff] }
 0x54e   : > { %v1181_v32 = vpack.c.bf16 %v1180_v31, %v1180_v31 }
 0x550   : > { %1647 = vmatmul.mubr.msk.bf16.vlgmr.msra.gmra.mxu1 %vm331_vm0, %v1181_v32 }
 0x551   : > { %1666 = vmatprep.mubr.msk.bf16.mxu1 %vm1856_vm1, %v1855_v4  ;;  %1651 = vmatpush3.bf16.msra.mxu1 %v1753_v52 }
 0x552   : > { %1652 = vmatprep.subr.bf16.mxu1 %v1855_v4 }
 0x555   : > { %1653 = vmatpush3.bf16.msra.mxu1 %v1754_v53 }
 0x556   : > { %1654 = vmatprep.subr.bf16.mxu1 %v1855_v4 }
 0x559   : > { %1655 = vmatpush3.bf16.msra.mxu1 %v1755_v54 }
 0x55a   : > { %1656 = vmatprep.subr.bf16.mxu1 %v1855_v4 }
 0x55d   : > { %1657 = vmatpush3.bf16.msra.mxu1 %v1756_v55 }
 0x55e   : > { %1658 = vmatprep.subr.bf16.mxu1 %v1855_v4 }
 0x561   : > { %1659 = vmatpush3.bf16.msra.mxu1 %v1757_v56 }
 0x562   : > { %1660 = vmatprep.subr.bf16.mxu1 %v1855_v4 }
 0x565   : > { %1661 = vmatpush3.bf16.msra.mxu1 %v1758_v57 }
 0x566   : > { %1662 = vmatprep.subr.bf16.mxu1 %v1855_v4 }
 0x569   : > { %1663 = vmatpush3.bf16.msra.mxu1 %v1759_v58 }
 0x56a   : > { %1664 = vmatprep.subr.bf16.mxu1 %v1855_v4 }
 0x56d   : > { %1665 = vmatpush3.bf16.msra.mxu1 %v1760_v59 }
 0x610   : > { %v1235_v33 = vpop.f32.mrf.mxu1 }
 0x611   : > { %v2208_v34 = vadd.f32 %v1235_v33, %v1993_v0  ;;  %v1752_v0 = vld [vmem:[%s2316_s7 + $0x4] ss:$8 sps:$4 sm:$0xff]  }
 0x612   : > { %v1648_v35 = vpop.f32.mrf.mxu1  ;;  %1300 = vmatprep.subr.bf16.mxu0 %v1752_v0 }
 0x613   : > { %v1242_v36 = vmul.f32 %v2208_v34, %v2208_v34  ;;  %1301 = vmatpush1.bf16.msra.mxu0 %v1750_v43 }
 0x614   : > { %v1238_v37 = vpop.f32.mrf.mxu1 }
 0x615   : > { %v1243_v38 = vsel %vm331_vm0, %v1242_v36, 0.0 }
 0x616   : > { %1244 = vadd.xlane.f32.xlu0 %v1243_v38  ;;  %v1649_v39 = vpop.f32.mrf.mxu1 }
 0x69f   : > { %v1245_v44 = vpop.xlane.xlu0 %1244 }
 0x6a0   : > { %v1246_v45 = vmul.f32 0.03125, %v1245_v44 }
 0x6a2   : > { %v1247_v46 = vadd.f32 1e-06, %v1246_v45 }
 0x6a4   : > { %1787 = vrsqrt.f32 %v1247_v46 }
 0x6b1   : > { %v1788_v47 = vpop.eup %1787 }
 0x6b2   : > { %v1249_v49 = vmul.f32 %v1788_v47, %v2208_v34 }
 0x6b4   : > { %v1257_v50 = vmul.f32 %v1536_v48, %v1249_v49 }
 0x6b6   : > { %v1258_v51 = vpack.c.bf16 %v1257_v50, %v1257_v50 }
 0x6b8   : > { %1541 = vmatmul.mubr.msk.bf16.vlgmr.msra.gmra.mxu0 %vm331_vm0, %v1258_v51 }
 0x778   : > { %v1320_v60 = vpop.f32.mrf.mxu0 }
 0x779   : > { %v1542_v61 = vmul.f32 -1.442695, %v1320_v60 }
 0x77a   : > { %v1322_v22 = vpop.f32.mrf.mxu0 }
 0x77b   : > { %1789 = vpow2.f32 %v1542_v61 }
 0x77c   : > { %v1324_v62 = vpop.f32.mrf.mxu0 }
 0x77e   : > { %v1325_v63 = vpop.f32.mrf.mxu0 }
 0x788   : > { %v1790_v1 = vpop.eup %1789 }
 0x789   : > { %v1330_v2 = vadd.f32 1.0, %v1790_v1 }
 0x78b   : > { %1791 = vrcp.f32 %v1330_v2 }
 0x798   : > { %v1792_v3 = vpop.eup %1791 }
 0x799   : > { %v1333_v6 = vmul.f32 %v1792_v3, %v1320_v60 }
 0x79b   : > { %v1334_v5 = vmul.f32 %v1333_v6, %v1322_v22 }
 0x79d   : > { %v1335_v8 = vpack.c.bf16 %v1334_v5, %v1334_v5 }
 0x79f   : > { %1667 = vmatmul.mubr.bf16.vlgmr.msra.gmra.mxu1 %v1335_v8 }
 0x85f   : > { %v1434_v4 = vpop.f32.mrf.mxu1 }
 0x860   : > { %v1440_v9 = vadd.f32 %v1434_v4, %v2208_v34 }
 0x861   : > { %v1668_v10 = vpop.f32.mrf.mxu1 }
 0x862   : > { %1441 = vst.msk [vmem:[%s323_s29] sm:$0xff] %vm331_vm0, %v1440_v9 }
 0x863   : > { %v1437_v11 = vpop.f32.mrf.mxu1 }
 0x864   : > { %1806 = shalt.err (!%p1803_p3)
}
 0x865   : > { %s1807_s26 = scalar_lea.hbm %s2267_s17, 128  ;;  %s1811_s29 = scalar_lea.hbm %s2318_s9, 256 }
 0x866   : > { %p1808_p4 = scmp.ne.s32.totalorder %s2267_s17, %s1807_s26  ;;  %p1812_p9 = scmp.lt.s32.totalorder %s2267_s17, %s2318_s9 }
 0x867   : > { %p1813_p10 = scmp.lt.s32.totalorder %s1811_s29, %s1807_s26 }
 0x868   : > { %p1809_p7 = pnand %p1808_p4, %p1978_p5 }
 0x869   : > { %p1814_p11 = por %p1813_p10, %p1812_p9 }
 0x86a   : > { %p1810_p8 = pneg %p1809_p7 }
 0x86c   : > { %p1815_p12 = pnand %p1814_p11, %p1810_p8 }
 0x86e   : > { %1818 = shalt.err (!%p1815_p12)
}
 0x86f   : > { %1670 = dma.vmem_to_hbm [thread:$0]  (%p1978_p5), %s2269_s14, 128, %s2267_s17, %s1443_s13   ;;  %v1669_v12 = vpop.f32.mrf.mxu1 }
 0x870 PF: > { %p1676_p13 = scmp.ge.s32.totalorder %s1853_s12, 2  ;;  %s1468_s21 = sand.u32 1, %s1841_s30  }
 0x871   : > { %s1469_s24 = scalar_lea.sflag [#allocation4], %s1468_s21 }
 0x872   : > { %p1673_p0 = pnand %p1676_p13, %p1982_p6 }
 0x874   : > { %p1674_p1 = pneg %p1673_p0 }
 0x876   : > { %1836 = dma.done.wait (%p1674_p1), %s1469_s24, 128  }
 0x877   : > { %1838 = vsyncadd (%p1674_p1), %s1469_s24, 4294967168  ;;  %p19_p2 = scmp.ge.s32.totalorder %s1965_s15, 4   ;;  %s2321_s30 = smov %s1845_s10 }
 0x878   : > { %s2322_s10 = smov %s1849_s11  ;;  %s2323_s11 = smov %s1976_s18 }
 0x879   : > { %s2324_s12 = smov %s1965_s15  ;;  %21 = sbr.rel (!%p19_p2) target bundleno = 3 (0x3), region = 91 }
 0x87e   :  { %1474 = vsyncpa [#allocation4], 1 }
 0x87f   :  { %1476 = vsyncpa [#allocation4 + $0x1], 1 }

</bundles_post_ra>
